<compile_context>
chip_gen: v5e
topology: v5e:2x2
jax: 0.10.0
libtpu: 0.0.40
codegen_flags: <defaults>
</compile_context>

<pallas_src>
import numpy as np
import jax
import jax.numpy as jnp
from jax.experimental import pallas as pl
from jax.experimental.pallas import tpu as pltpu

# ----- module hyper-parameters (consistent with __init__) ---------------------
WIDTH = 32
DEPTH = 2
INPUT_DIM = 3
COLOR_OUT = 3
NORMAL_OUT = 3
LABEL_OUT = 1

# tcnn HashGrid config from __init__
N_LEVELS = 16
FEATS_PER_LEVEL = 2
LOG2_HASHMAP = 15
BASE_RES = 16
PER_LEVEL_SCALE = 1.5
ENC_DIM = N_LEVELS * FEATS_PER_LEVEL          # 32 = encoding.n_output_dims
OUT_DIM = COLOR_OUT + NORMAL_OUT + LABEL_OUT  # 7
OUT_PAD = 8                                   # 8-sublane output -> unmasked stores
BR_DIM = 3 * WIDTH                            # 96: packed branch hidden width
SLAB = 128                                    # in-kernel lane slab (bounds vregs)


# ----- hash-grid encoding (plain-JAX glue, feature-major output) --------------
def hash_encode_t(x, tables):
    """Multi-resolution hash-grid encoding (tinycudann-style), transposed.

    x: (N, 3) float32 in [0, 1];  tables: (n_levels, 2^15, 2) float32.
    Returns (32, N) float32 (features on sublanes, points on lanes).
    """
    # TODO(synk): the data-dependent hash-table gather is implemented in plain
    # JAX (approximating tcnn.Encoding('HashGrid'), not bit-exact) and is the
    # dominant end-to-end cost at large N; a dedicated Pallas gather kernel
    # (tables fit in VMEM: 4 MiB) is left as future work.  It is kept under the
    # same jit as the Pallas MLP so XLA fuses the producer with the kernel feed.
    T = 1 << LOG2_HASHMAP
    primes = np.array([1, 2654435761, 805459861], dtype=np.uint32)
    n = x.shape[0]
    feats = []
    for lvl in range(N_LEVELS):
        res = int(np.floor(BASE_RES * (PER_LEVEL_SCALE ** lvl)))
        xs = x * res
        x0 = jnp.floor(xs)
        w = xs - x0
        x0i = x0.astype(jnp.int32)
        acc = jnp.zeros((FEATS_PER_LEVEL, n), jnp.float32)
        for corner in range(8):
            offs = np.array([(corner >> d) & 1 for d in range(3)], dtype=np.int32)
            c = (x0i + offs[None, :]).astype(jnp.uint32)
            h = (c[:, 0] * primes[0]) ^ (c[:, 1] * primes[1]) ^ (c[:, 2] * primes[2])
            idx = (h % jnp.uint32(T)).astype(jnp.int32)
            wc = jnp.prod(jnp.where(offs[None, :] == 1, w, 1.0 - w), axis=-1)  # (N,)
            acc = acc + wc[None, :] * tables[lvl][idx].T                       # (2, N)
        feats.append(acc)
    return jnp.concatenate(feats, axis=0)                                      # (32, N)


# ----- Pallas kernel: base MLP + fused color / normal / label heads -----------
def nsf_kernel(x_ref,
               wb1, bb1, wb2, bb2,      # base   : (32,32)+(32,1) x2
               wbr1, bbr1,              # packed branch layer 1: (96,32)+(96,1)
               wbr2, bbr2,              # packed block-diag layer 2: (8,96)+(8,1)
               out_ref):
    f32 = jnp.float32
    # Weights stay resident in vregs for the whole grid step (~12 KiB in bf16).
    w1, b1 = wb1[...], bb1[...]
    w2, b2 = wb2[...], bb2[...]
    wr1, br1 = wbr1[...], bbr1[...]
    wr2, br2 = wbr2[...], bbr2[...]
    cd = w1.dtype                                     # compute dtype (bf16)

    # Row-selection masks, hoisted out of the slab loop (JAX does not CSE them).
    row = jax.lax.broadcasted_iota(jnp.int32, (OUT_PAD, SLAB), 0)
    is_color = row < COLOR_OUT                                          # rows 0..2
    is_norm = jnp.logical_and(row >= COLOR_OUT, row < COLOR_OUT + NORMAL_OUT)
    ez = jnp.where(row == COLOR_OUT + NORMAL_OUT - 1, 1.0, 0.0).astype(f32)

    n_slabs = x_ref.shape[-1] // SLAB                                   # static

    def slab(j, carry):
        s = pl.ds(pl.multiple_of(j * SLAB, SLAB), SLAB)
        x = x_ref[:, s].astype(cd)                                      # (32, SLAB)

        # base MLP (depth = 2): Linear -> ReLU -> Linear
        h = jnp.dot(w1, x, preferred_element_type=f32) + b1
        h = jnp.maximum(h, 0.0).astype(cd)
        h = jnp.dot(w2, h, preferred_element_type=f32) + b2
        hr = jnp.maximum(h, 0.0).astype(cd)        # every branch starts with ReLU

        # all three branch hidden layers in one matmul
        y1 = jnp.dot(wr1, hr, preferred_element_type=f32) + br1         # (96, SLAB)
        y1 = jnp.maximum(y1, 0.0).astype(cd)
        # all three branch output layers via one block-diagonal matmul
        z = jnp.dot(wr2, y1, preferred_element_type=f32) + br2          # (8, SLAB)

        # One tanh pass: rows 0-2 sigmoid(z) = 0.5*(1 + tanh(z/2)); rows 3-5
        # tanh(z); rows 6-7 identity.
        t = jnp.tanh(jnp.where(is_color, 0.5 * z, z))
        act = jnp.where(is_color, 0.5 * (t + 1.0), jnp.where(is_norm, t, z))
        act = act + ez                                   # normal += [0, 0, 1]

        # F.normalize(p=2, dim=-1) on the normal rows only.
        nm = jnp.where(is_norm, act, 0.0)
        sumsq = jnp.sum(nm * nm, axis=0, keepdims=True)  # (1, SLAB) sublane reduce
        inv = jax.lax.rsqrt(jnp.maximum(sumsq, 1e-24))   # == 1/max(||v||, 1e-12)
        out_ref[:, s] = jnp.where(is_norm, act * inv, act)
        return carry

    jax.lax.fori_loop(0, n_slabs, slab, 0, unroll=True)


def _round_up(a, b):
    return -(-a // b) * b


def neural_style_field(x_enc_t, packed, *, tile_n=2048):
    """x_enc_t: (ENC_DIM, N) features; packed = 8 packed weight/bias arrays.

    Returns (OUT_PAD, N) float32: rows 0-2 sigmoid(color), rows 3-5 normalized
    (tanh(normal) + e_z), row 6 label, row 7 zero padding.
    """
    d, n = x_enc_t.shape
    assert d == ENC_DIM
    x_enc_t = x_enc_t.astype(packed[0].dtype)          # bf16 feed (fuses w/ producer)

    # Keep the grid >= 2 so both v7x TensorCores get work ("parallel" axis);
    # harmless on single-TC v5e/v6e (only shrinks tiles when N is small).
    tile_n = min(tile_n, _round_up(pl.cdiv(n, 2), SLAB))
    tile_n = max(SLAB, (tile_n // SLAB) * SLAB)

    in_specs = [pl.BlockSpec((ENC_DIM, tile_n), lambda i: (0, i))]
    in_specs += [pl.BlockSpec(p.shape, lambda i: (0, 0)) for p in packed]

    return pl.pallas_call(
        nsf_kernel,
        out_shape=jax.ShapeDtypeStruct((OUT_PAD, n), jnp.float32),
        grid_spec=pltpu.PrefetchScalarGridSpec(
            num_scalar_prefetch=0,
            grid=(pl.cdiv(n, tile_n),),      # partial last block masked by Pallas
            in_specs=in_specs,
            out_specs=pl.BlockSpec((OUT_PAD, tile_n), lambda i: (0, i)),
        ),
        compiler_params=pltpu.CompilerParams(
            dimension_semantics=("parallel",)),
    )(x_enc_t, *packed)


def nsf_forward_t(x, tables, packed, *, tile_n=2048):
    """(N, 3) points -> (8, N) lane-dense output (rows 0-6 valid, row 7 zero)."""
    x_enc_t = hash_encode_t(x, tables)                  # (32, N), fuses under jit
    return neural_style_field(x_enc_t, packed, tile_n=tile_n)


def nsf_forward(x, tables, packed, *, tile_n=2048):
    """Module semantics: (N, 3) -> (N, 7).

    The (7,N)->(N,7) transpose happens exactly once here, at the very end;
    downstream kernels should prefer nsf_forward_t's (8, N) lane-dense layout.
    """
    return nsf_forward_t(x, tables, packed, tile_n=tile_n)[:OUT_DIM].T


# ----- deterministic parameter init (PyTorch-Linear-style uniform) ------------
def init_params(key):
    """Flat list [W, b] * 8 with W as (in, out), b as (1, out), float32."""
    dims = [
        (ENC_DIM, WIDTH), (WIDTH, WIDTH),      # base
        (WIDTH, WIDTH), (WIDTH, COLOR_OUT),    # color branch
        (WIDTH, WIDTH), (WIDTH, NORMAL_OUT),   # normal branch
        (WIDTH, WIDTH), (WIDTH, LABEL_OUT),    # label branch
    ]
    params = []
    for din, dout in dims:
        key, kw, kb = jax.random.split(key, 3)
        bound = 1.0 / np.sqrt(din)
        params.append(jax.random.uniform(kw, (din, dout), jnp.float32, -bound, bound))
        params.append(jax.random.uniform(kb, (1, dout), jnp.float32, -bound, bound))
    return params


def pack_params(params, weight_dtype=jnp.bfloat16):
    """16-array list -> 8 packed (out, in)-layout buffers (weights in bf16)."""
    (bw1, bb1, bw2, bb2, cw1, cb1, cw2, cb2,
     nw1, nb1, nw2, nb2, lw1, lb1, lw2, lb2) = params
    wb1, b1 = bw1.T.astype(weight_dtype), bb1.T                    # (32,32), (32,1) f32
    wb2, b2 = bw2.T.astype(weight_dtype), bb2.T
    wbr1 = jnp.concatenate([cw1.T, nw1.T, lw1.T], axis=0).astype(weight_dtype)  # (96,32)
    bbr1 = jnp.concatenate([cb1.T, nb1.T, lb1.T], axis=0)                       # (96,1)
    wbr2 = jnp.zeros((OUT_PAD, BR_DIM), jnp.float32)               # block-diag (8,96)
    wbr2 = wbr2.at[0:3, 0:32].set(cw2.T)
    wbr2 = wbr2.at[3:6, 32:64].set(nw2.T)
    wbr2 = wbr2.at[6:7, 64:96].set(lw2.T)
    wbr2 = wbr2.astype(weight_dtype)
    bbr2 = jnp.concatenate([cb2.T, nb2.T, lb2.T,
                            jnp.zeros((1, 1), jnp.float32)], axis=0)            # (8,1)
    return [wb1, b1, wb2, b2, wbr1, bbr1, wbr2, bbr2]


# ----- pure-JAX reference (matched- or full-precision) ------------------------
def reference_forward(x_enc, params, compute_dtype=jnp.float32):
    """Reference forward.  compute_dtype=bfloat16 mirrors the kernel's cast
    points (bf16 matmul inputs, f32 accumulation, f32 biases/epilogue)."""
    cd = compute_dtype
    (bw1, bb1, bw2, bb2, cw1, cb1, cw2, cb2,
     nw1, nb1, nw2, nb2, lw1, lb1, lw2, lb2) = params

    def lin(a, w, b):
        return jnp.dot(a.astype(cd), w.astype(cd),
                       preferred_element_type=jnp.float32) + b

    h = jnp.maximum(lin(x_enc, bw1, bb1), 0.0)
    hr = jnp.maximum(lin(h, bw2, bb2), 0.0)
    c = lin(jnp.maximum(lin(hr, cw1, cb1), 0.0), cw2, cb2)
    nrm = lin(jnp.maximum(lin(hr, nw1, nb1), 0.0), nw2, nb2)
    lab = lin(jnp.maximum(lin(hr, lw1, lb1), 0.0), lw2, lb2)
    colors = jax.nn.sigmoid(c)
    normal = jnp.tanh(nrm) + jnp.array([0.0, 0.0, 1.0], jnp.float32)
    normal = normal / jnp.maximum(
        jnp.sqrt(jnp.sum(normal * normal, -1, keepdims=True)), 1e-12)
    return jnp.concatenate([colors, normal, lab], axis=-1)


if __name__ == "__main__":
    key = jax.random.PRNGKey(0)
    key, kx, kt, kp = jax.random.split(key, 4)

    N = 1024                       # small test; tile clamp -> grid of 2 (both v7x TCs)
    x = jax.random.uniform(kx, (N, INPUT_DIM), jnp.float32)        # points in [0,1]^3
    tables = jax.random.uniform(kt, (N_LEVELS, 1 << LOG2_HASHMAP, FEATS_PER_LEVEL),
                                jnp.float32, -1e-4, 1e-4)
    params = init_params(kp)
    packed = pack_params(params)                                   # bf16 weights

    fwd = jax.jit(nsf_forward)                                     # encode + kernel fused
    out = jax.block_until_ready(fwd(x, tables, packed))            # (N, 7)
    assert out.shape == (N, OUT_DIM) and out.dtype == jnp.float32

    x_enc = hash_encode_t(x, tables).T                             # (N, 32) f32
    # 1) kernel vs matched-precision reference (bf16 inputs, f32 accumulation):
    #    proves the kernel math is faithful to the intended computation.
    ref_bf16 = jax.block_until_ready(
        reference_forward(x_enc, params, compute_dtype=jnp.bfloat16))
    np.testing.assert_allclose(np.asarray(out), np.asarray(ref_bf16),
                               rtol=1e-4, atol=1e-4)
    # 2) kernel vs pure-float32 reference: sanity bound on the bf16-input error.
    ref_f32 = jax.block_until_ready(
        reference_forward(x_enc, params, compute_dtype=jnp.float32))
    np.testing.assert_allclose(np.asarray(out), np.asarray(ref_f32),
                               rtol=5e-2, atol=5e-2)
    print("KERNEL_OK")
</pallas_src>

<mosaic_0001>
module attributes {stable_mosaic.version = 11 : i64} {
  func.func @nsf_kernel(%arg0: i32, %arg1: memref<32x512xbf16, #tpu.memory_space<vmem>>, %arg2: memref<32x32xbf16, #tpu.memory_space<vmem>>, %arg3: memref<32x1xf32, #tpu.memory_space<vmem>>, %arg4: memref<32x32xbf16, #tpu.memory_space<vmem>>, %arg5: memref<32x1xf32, #tpu.memory_space<vmem>>, %arg6: memref<96x32xbf16, #tpu.memory_space<vmem>>, %arg7: memref<96x1xf32, #tpu.memory_space<vmem>>, %arg8: memref<8x96xbf16, #tpu.memory_space<vmem>>, %arg9: memref<8x1xf32, #tpu.memory_space<vmem>>, %arg10: memref<8x512xf32, #tpu.memory_space<vmem>>) attributes {dimension_semantics = [#tpu.dimension_semantics<parallel>], iteration_bounds = array<i64: 2>, scalar_prefetch = 0 : i64, scratch_operands = 0 : i64, tpu.core_type = #tpu.core_type<tc>, window_params = [{transform_indices = @transform_0, window_bounds = array<i64: 32, 512>}, {pipeline_mode = #tpu.pipeline_mode<synchronous>, transform_indices = @transform_1, window_bounds = array<i64: 32, 32>}, {pipeline_mode = #tpu.pipeline_mode<synchronous>, transform_indices = @transform_2, window_bounds = array<i64: 32, 1>}, {pipeline_mode = #tpu.pipeline_mode<synchronous>, transform_indices = @transform_3, window_bounds = array<i64: 32, 32>}, {pipeline_mode = #tpu.pipeline_mode<synchronous>, transform_indices = @transform_4, window_bounds = array<i64: 32, 1>}, {pipeline_mode = #tpu.pipeline_mode<synchronous>, transform_indices = @transform_5, window_bounds = array<i64: 96, 32>}, {pipeline_mode = #tpu.pipeline_mode<synchronous>, transform_indices = @transform_6, window_bounds = array<i64: 96, 1>}, {pipeline_mode = #tpu.pipeline_mode<synchronous>, transform_indices = @transform_7, window_bounds = array<i64: 8, 96>}, {pipeline_mode = #tpu.pipeline_mode<synchronous>, transform_indices = @transform_8, window_bounds = array<i64: 8, 1>}, {transform_indices = @transform_9, window_bounds = array<i64: 8, 512>}]} {
    %c0 = arith.constant 0 : index
    %c0_0 = arith.constant 0 : index
    %0 = vector.load %arg2[%c0, %c0_0] : memref<32x32xbf16, #tpu.memory_space<vmem>>, vector<32x32xbf16>
    %c0_1 = arith.constant 0 : index
    %c0_2 = arith.constant 0 : index
    %1 = vector.load %arg3[%c0_1, %c0_2] : memref<32x1xf32, #tpu.memory_space<vmem>>, vector<32x1xf32>
    %c0_3 = arith.constant 0 : index
    %c0_4 = arith.constant 0 : index
    %2 = vector.load %arg4[%c0_3, %c0_4] : memref<32x32xbf16, #tpu.memory_space<vmem>>, vector<32x32xbf16>
    %c0_5 = arith.constant 0 : index
    %c0_6 = arith.constant 0 : index
    %3 = vector.load %arg5[%c0_5, %c0_6] : memref<32x1xf32, #tpu.memory_space<vmem>>, vector<32x1xf32>
    %c0_7 = arith.constant 0 : index
    %c0_8 = arith.constant 0 : index
    %4 = vector.load %arg6[%c0_7, %c0_8] : memref<96x32xbf16, #tpu.memory_space<vmem>>, vector<96x32xbf16>
    %c0_9 = arith.constant 0 : index
    %c0_10 = arith.constant 0 : index
    %5 = vector.load %arg7[%c0_9, %c0_10] : memref<96x1xf32, #tpu.memory_space<vmem>>, vector<96x1xf32>
    %c0_11 = arith.constant 0 : index
    %c0_12 = arith.constant 0 : index
    %6 = vector.load %arg8[%c0_11, %c0_12] : memref<8x96xbf16, #tpu.memory_space<vmem>>, vector<8x96xbf16>
    %c0_13 = arith.constant 0 : index
    %c0_14 = arith.constant 0 : index
    %7 = vector.load %arg9[%c0_13, %c0_14] : memref<8x1xf32, #tpu.memory_space<vmem>>, vector<8x1xf32>
    %8 = tpu.iota {dimensions = array<i32: 0>} : vector<8x128xi32>
    %c3_i32 = arith.constant 3 : i32
    %9 = vector.broadcast %c3_i32 : i32 to vector<8x128xi32>
    %10 = arith.cmpi slt, %8, %9 : vector<8x128xi32>
    %c3_i32_15 = arith.constant 3 : i32
    %11 = vector.broadcast %c3_i32_15 : i32 to vector<8x128xi32>
    %12 = arith.cmpi sge, %8, %11 : vector<8x128xi32>
    %c6_i32 = arith.constant 6 : i32
    %13 = vector.broadcast %c6_i32 : i32 to vector<8x128xi32>
    %14 = arith.cmpi slt, %8, %13 : vector<8x128xi32>
    %15 = arith.andi %12, %14 : vector<8x128xi1>
    %c5_i32 = arith.constant 5 : i32
    %16 = vector.broadcast %c5_i32 : i32 to vector<8x128xi32>
    %17 = arith.cmpi eq, %8, %16 : vector<8x128xi32>
    %cst = arith.constant 1.000000e+00 : f32
    %cst_16 = arith.constant 0.000000e+00 : f32
    %18 = vector.broadcast %cst : f32 to vector<8x128xf32>
    %19 = vector.broadcast %cst_16 : f32 to vector<8x128xf32>
    %20 = arith.select %17, %18, %19 : vector<8x128xi1>, vector<8x128xf32>
    %c0_i32 = arith.constant 0 : i32
    %c128_i32 = arith.constant 128 : i32
    %21 = arith.muli %c0_i32, %c128_i32 : i32
    %22 = tpu.assume_multiple %21, 128 : i32
    %c0_17 = arith.constant 0 : index
    %23 = arith.index_cast %22 : i32 to index
    %24 = vector.load %arg1[%c0_17, %23] : memref<32x512xbf16, #tpu.memory_space<vmem>>, vector<32x128xbf16>
    %cst_18 = arith.constant dense<0.000000e+00> : vector<32x128xf32>
    %25 = tpu.matmul %0, %24, %cst_18 {dimension_numbers = #tpu.dot_dimension_numbers<[1], [0], [0], [1], [0, 0, 1, 1], [], []>} : vector<32x32xbf16>, vector<32x128xbf16>, vector<32x128xf32> -> vector<32x128xf32>
    %26 = vector.broadcast %1 : vector<32x1xf32> to vector<32x128xf32>
    %27 = arith.addf %25, %26 : vector<32x128xf32>
    %cst_19 = arith.constant 0.000000e+00 : f32
    %28 = vector.broadcast %cst_19 : f32 to vector<32x128xf32>
    %29 = arith.maximumf %27, %28 : vector<32x128xf32>
    %30 = arith.truncf %29 : vector<32x128xf32> to vector<32x128xbf16>
    %cst_20 = arith.constant dense<0.000000e+00> : vector<32x128xf32>
    %31 = tpu.matmul %2, %30, %cst_20 {dimension_numbers = #tpu.dot_dimension_numbers<[1], [0], [0], [1], [0, 0, 1, 1], [], []>} : vector<32x32xbf16>, vector<32x128xbf16>, vector<32x128xf32> -> vector<32x128xf32>
    %32 = vector.broadcast %3 : vector<32x1xf32> to vector<32x128xf32>
    %33 = arith.addf %31, %32 : vector<32x128xf32>
    %cst_21 = arith.constant 0.000000e+00 : f32
    %34 = vector.broadcast %cst_21 : f32 to vector<32x128xf32>
    %35 = arith.maximumf %33, %34 : vector<32x128xf32>
    %36 = arith.truncf %35 : vector<32x128xf32> to vector<32x128xbf16>
    %cst_22 = arith.constant dense<0.000000e+00> : vector<96x128xf32>
    %37 = tpu.matmul %4, %36, %cst_22 {dimension_numbers = #tpu.dot_dimension_numbers<[1], [0], [0], [1], [0, 0, 1, 1], [], []>} : vector<96x32xbf16>, vector<32x128xbf16>, vector<96x128xf32> -> vector<96x128xf32>
    %38 = vector.broadcast %5 : vector<96x1xf32> to vector<96x128xf32>
    %39 = arith.addf %37, %38 : vector<96x128xf32>
    %cst_23 = arith.constant 0.000000e+00 : f32
    %40 = vector.broadcast %cst_23 : f32 to vector<96x128xf32>
    %41 = arith.maximumf %39, %40 : vector<96x128xf32>
    %42 = arith.truncf %41 : vector<96x128xf32> to vector<96x128xbf16>
    %cst_24 = arith.constant dense<0.000000e+00> : vector<8x128xf32>
    %43 = tpu.matmul %6, %42, %cst_24 {dimension_numbers = #tpu.dot_dimension_numbers<[1], [0], [0], [1], [0, 0, 1, 1], [], []>} : vector<8x96xbf16>, vector<96x128xbf16>, vector<8x128xf32> -> vector<8x128xf32>
    %44 = vector.broadcast %7 : vector<8x1xf32> to vector<8x128xf32>
    %45 = arith.addf %43, %44 : vector<8x128xf32>
    %cst_25 = arith.constant 5.000000e-01 : f32
    %46 = vector.broadcast %cst_25 : f32 to vector<8x128xf32>
    %47 = arith.mulf %46, %45 : vector<8x128xf32>
    %48 = arith.select %10, %47, %45 : vector<8x128xi1>, vector<8x128xf32>
    %49 = math.tanh %48 : vector<8x128xf32>
    %cst_26 = arith.constant 1.000000e+00 : f32
    %50 = vector.broadcast %cst_26 : f32 to vector<8x128xf32>
    %51 = arith.addf %49, %50 : vector<8x128xf32>
    %cst_27 = arith.constant 5.000000e-01 : f32
    %52 = vector.broadcast %cst_27 : f32 to vector<8x128xf32>
    %53 = arith.mulf %52, %51 : vector<8x128xf32>
    %54 = arith.select %15, %49, %45 : vector<8x128xi1>, vector<8x128xf32>
    %55 = arith.select %10, %53, %54 : vector<8x128xi1>, vector<8x128xf32>
    %56 = arith.addf %55, %20 : vector<8x128xf32>
    %cst_28 = arith.constant 0.000000e+00 : f32
    %57 = vector.broadcast %cst_28 : f32 to vector<8x128xf32>
    %58 = arith.select %15, %56, %57 : vector<8x128xi1>, vector<8x128xf32>
    %59 = arith.mulf %58, %58 : vector<8x128xf32>
    %cst_29 = arith.constant dense<0.000000e+00> : vector<128xf32>
    %60 = vector.multi_reduction <add>, %59, %cst_29 [0] : vector<8x128xf32> to vector<128xf32>
    %61 = vector.shape_cast %60 : vector<128xf32> to vector<1x128xf32>
    %cst_30 = arith.constant 1.000000e-24 : f32
    %62 = vector.broadcast %cst_30 : f32 to vector<1x128xf32>
    %63 = arith.maximumf %61, %62 : vector<1x128xf32>
    %64 = math.rsqrt %63 : vector<1x128xf32>
    %65 = vector.broadcast %64 : vector<1x128xf32> to vector<8x128xf32>
    %66 = arith.mulf %56, %65 : vector<8x128xf32>
    %67 = arith.select %15, %66, %56 : vector<8x128xi1>, vector<8x128xf32>
    %c0_31 = arith.constant 0 : index
    %68 = arith.index_cast %22 : i32 to index
    %69 = vector.load %arg10[%c0_31, %68] : memref<8x512xf32, #tpu.memory_space<vmem>>, vector<8x128xf32>
    tpu.vector_store %arg10[%c0_31, %68], %67 {strides = array<i32>} : memref<8x512xf32, #tpu.memory_space<vmem>>, vector<8x128xf32>,
    %c1_i32 = arith.constant 1 : i32
    %c128_i32_32 = arith.constant 128 : i32
    %70 = arith.muli %c1_i32, %c128_i32_32 : i32
    %71 = tpu.assume_multiple %70, 128 : i32
    %c0_33 = arith.constant 0 : index
    %72 = arith.index_cast %71 : i32 to index
    %73 = vector.load %arg1[%c0_33, %72] : memref<32x512xbf16, #tpu.memory_space<vmem>>, vector<32x128xbf16>
    %cst_34 = arith.constant dense<0.000000e+00> : vector<32x128xf32>
    %74 = tpu.matmul %0, %73, %cst_34 {dimension_numbers = #tpu.dot_dimension_numbers<[1], [0], [0], [1], [0, 0, 1, 1], [], []>} : vector<32x32xbf16>, vector<32x128xbf16>, vector<32x128xf32> -> vector<32x128xf32>
    %75 = vector.broadcast %1 : vector<32x1xf32> to vector<32x128xf32>
    %76 = arith.addf %74, %75 : vector<32x128xf32>
    %cst_35 = arith.constant 0.000000e+00 : f32
    %77 = vector.broadcast %cst_35 : f32 to vector<32x128xf32>
    %78 = arith.maximumf %76, %77 : vector<32x128xf32>
    %79 = arith.truncf %78 : vector<32x128xf32> to vector<32x128xbf16>
    %cst_36 = arith.constant dense<0.000000e+00> : vector<32x128xf32>
    %80 = tpu.matmul %2, %79, %cst_36 {dimension_numbers = #tpu.dot_dimension_numbers<[1], [0], [0], [1], [0, 0, 1, 1], [], []>} : vector<32x32xbf16>, vector<32x128xbf16>, vector<32x128xf32> -> vector<32x128xf32>
    %81 = vector.broadcast %3 : vector<32x1xf32> to vector<32x128xf32>
    %82 = arith.addf %80, %81 : vector<32x128xf32>
    %cst_37 = arith.constant 0.000000e+00 : f32
    %83 = vector.broadcast %cst_37 : f32 to vector<32x128xf32>
    %84 = arith.maximumf %82, %83 : vector<32x128xf32>
    %85 = arith.truncf %84 : vector<32x128xf32> to vector<32x128xbf16>
    %cst_38 = arith.constant dense<0.000000e+00> : vector<96x128xf32>
    %86 = tpu.matmul %4, %85, %cst_38 {dimension_numbers = #tpu.dot_dimension_numbers<[1], [0], [0], [1], [0, 0, 1, 1], [], []>} : vector<96x32xbf16>, vector<32x128xbf16>, vector<96x128xf32> -> vector<96x128xf32>
    %87 = vector.broadcast %5 : vector<96x1xf32> to vector<96x128xf32>
    %88 = arith.addf %86, %87 : vector<96x128xf32>
    %cst_39 = arith.constant 0.000000e+00 : f32
    %89 = vector.broadcast %cst_39 : f32 to vector<96x128xf32>
    %90 = arith.maximumf %88, %89 : vector<96x128xf32>
    %91 = arith.truncf %90 : vector<96x128xf32> to vector<96x128xbf16>
    %cst_40 = arith.constant dense<0.000000e+00> : vector<8x128xf32>
    %92 = tpu.matmul %6, %91, %cst_40 {dimension_numbers = #tpu.dot_dimension_numbers<[1], [0], [0], [1], [0, 0, 1, 1], [], []>} : vector<8x96xbf16>, vector<96x128xbf16>, vector<8x128xf32> -> vector<8x128xf32>
    %93 = vector.broadcast %7 : vector<8x1xf32> to vector<8x128xf32>
    %94 = arith.addf %92, %93 : vector<8x128xf32>
    %cst_41 = arith.constant 5.000000e-01 : f32
    %95 = vector.broadcast %cst_41 : f32 to vector<8x128xf32>
    %96 = arith.mulf %95, %94 : vector<8x128xf32>
    %97 = arith.select %10, %96, %94 : vector<8x128xi1>, vector<8x128xf32>
    %98 = math.tanh %97 : vector<8x128xf32>
    %cst_42 = arith.constant 1.000000e+00 : f32
    %99 = vector.broadcast %cst_42 : f32 to vector<8x128xf32>
    %100 = arith.addf %98, %99 : vector<8x128xf32>
    %cst_43 = arith.constant 5.000000e-01 : f32
    %101 = vector.broadcast %cst_43 : f32 to vector<8x128xf32>
    %102 = arith.mulf %101, %100 : vector<8x128xf32>
    %103 = arith.select %15, %98, %94 : vector<8x128xi1>, vector<8x128xf32>
    %104 = arith.select %10, %102, %103 : vector<8x128xi1>, vector<8x128xf32>
    %105 = arith.addf %104, %20 : vector<8x128xf32>
    %cst_44 = arith.constant 0.000000e+00 : f32
    %106 = vector.broadcast %cst_44 : f32 to vector<8x128xf32>
    %107 = arith.select %15, %105, %106 : vector<8x128xi1>, vector<8x128xf32>
    %108 = arith.mulf %107, %107 : vector<8x128xf32>
    %cst_45 = arith.constant dense<0.000000e+00> : vector<128xf32>
    %109 = vector.multi_reduction <add>, %108, %cst_45 [0] : vector<8x128xf32> to vector<128xf32>
    %110 = vector.shape_cast %109 : vector<128xf32> to vector<1x128xf32>
    %cst_46 = arith.constant 1.000000e-24 : f32
    %111 = vector.broadcast %cst_46 : f32 to vector<1x128xf32>
    %112 = arith.maximumf %110, %111 : vector<1x128xf32>
    %113 = math.rsqrt %112 : vector<1x128xf32>
    %114 = vector.broadcast %113 : vector<1x128xf32> to vector<8x128xf32>
    %115 = arith.mulf %105, %114 : vector<8x128xf32>
    %116 = arith.select %15, %115, %105 : vector<8x128xi1>, vector<8x128xf32>
    %c0_47 = arith.constant 0 : index
    %117 = arith.index_cast %71 : i32 to index
    %118 = vector.load %arg10[%c0_47, %117] : memref<8x512xf32, #tpu.memory_space<vmem>>, vector<8x128xf32>
    tpu.vector_store %arg10[%c0_47, %117], %116 {strides = array<i32>} : memref<8x512xf32, #tpu.memory_space<vmem>>, vector<8x128xf32>,
    %c2_i32 = arith.constant 2 : i32
    %c128_i32_48 = arith.constant 128 : i32
    %119 = arith.muli %c2_i32, %c128_i32_48 : i32
    %120 = tpu.assume_multiple %119, 128 : i32
    %c0_49 = arith.constant 0 : index
    %121 = arith.index_cast %120 : i32 to index
    %122 = vector.load %arg1[%c0_49, %121] : memref<32x512xbf16, #tpu.memory_space<vmem>>, vector<32x128xbf16>
    %cst_50 = arith.constant dense<0.000000e+00> : vector<32x128xf32>
    %123 = tpu.matmul %0, %122, %cst_50 {dimension_numbers = #tpu.dot_dimension_numbers<[1], [0], [0], [1], [0, 0, 1, 1], [], []>} : vector<32x32xbf16>, vector<32x128xbf16>, vector<32x128xf32> -> vector<32x128xf32>
    %124 = vector.broadcast %1 : vector<32x1xf32> to vector<32x128xf32>
    %125 = arith.addf %123, %124 : vector<32x128xf32>
    %cst_51 = arith.constant 0.000000e+00 : f32
    %126 = vector.broadcast %cst_51 : f32 to vector<32x128xf32>
    %127 = arith.maximumf %125, %126 : vector<32x128xf32>
    %128 = arith.truncf %127 : vector<32x128xf32> to vector<32x128xbf16>
    %cst_52 = arith.constant dense<0.000000e+00> : vector<32x128xf32>
    %129 = tpu.matmul %2, %128, %cst_52 {dimension_numbers = #tpu.dot_dimension_numbers<[1], [0], [0], [1], [0, 0, 1, 1], [], []>} : vector<32x32xbf16>, vector<32x128xbf16>, vector<32x128xf32> -> vector<32x128xf32>
    %130 = vector.broadcast %3 : vector<32x1xf32> to vector<32x128xf32>
    %131 = arith.addf %129, %130 : vector<32x128xf32>
    %cst_53 = arith.constant 0.000000e+00 : f32
    %132 = vector.broadcast %cst_53 : f32 to vector<32x128xf32>
    %133 = arith.maximumf %131, %132 : vector<32x128xf32>
    %134 = arith.truncf %133 : vector<32x128xf32> to vector<32x128xbf16>
    %cst_54 = arith.constant dense<0.000000e+00> : vector<96x128xf32>
    %135 = tpu.matmul %4, %134, %cst_54 {dimension_numbers = #tpu.dot_dimension_numbers<[1], [0], [0], [1], [0, 0, 1, 1], [], []>} : vector<96x32xbf16>, vector<32x128xbf16>, vector<96x128xf32> -> vector<96x128xf32>
    %136 = vector.broadcast %5 : vector<96x1xf32> to vector<96x128xf32>
    %137 = arith.addf %135, %136 : vector<96x128xf32>
    %cst_55 = arith.constant 0.000000e+00 : f32
    %138 = vector.broadcast %cst_55 : f32 to vector<96x128xf32>
    %139 = arith.maximumf %137, %138 : vector<96x128xf32>
    %140 = arith.truncf %139 : vector<96x128xf32> to vector<96x128xbf16>
    %cst_56 = arith.constant dense<0.000000e+00> : vector<8x128xf32>
    %141 = tpu.matmul %6, %140, %cst_56 {dimension_numbers = #tpu.dot_dimension_numbers<[1], [0], [0], [1], [0, 0, 1, 1], [], []>} : vector<8x96xbf16>, vector<96x128xbf16>, vector<8x128xf32> -> vector<8x128xf32>
    %142 = vector.broadcast %7 : vector<8x1xf32> to vector<8x128xf32>
    %143 = arith.addf %141, %142 : vector<8x128xf32>
    %cst_57 = arith.constant 5.000000e-01 : f32
    %144 = vector.broadcast %cst_57 : f32 to vector<8x128xf32>
    %145 = arith.mulf %144, %143 : vector<8x128xf32>
    %146 = arith.select %10, %145, %143 : vector<8x128xi1>, vector<8x128xf32>
    %147 = math.tanh %146 : vector<8x128xf32>
    %cst_58 = arith.constant 1.000000e+00 : f32
    %148 = vector.broadcast %cst_58 : f32 to vector<8x128xf32>
    %149 = arith.addf %147, %148 : vector<8x128xf32>
    %cst_59 = arith.constant 5.000000e-01 : f32
    %150 = vector.broadcast %cst_59 : f32 to vector<8x128xf32>
    %151 = arith.mulf %150, %149 : vector<8x128xf32>
    %152 = arith.select %15, %147, %143 : vector<8x128xi1>, vector<8x128xf32>
    %153 = arith.select %10, %151, %152 : vector<8x128xi1>, vector<8x128xf32>
    %154 = arith.addf %153, %20 : vector<8x128xf32>
    %cst_60 = arith.constant 0.000000e+00 : f32
    %155 = vector.broadcast %cst_60 : f32 to vector<8x128xf32>
    %156 = arith.select %15, %154, %155 : vector<8x128xi1>, vector<8x128xf32>
    %157 = arith.mulf %156, %156 : vector<8x128xf32>
    %cst_61 = arith.constant dense<0.000000e+00> : vector<128xf32>
    %158 = vector.multi_reduction <add>, %157, %cst_61 [0] : vector<8x128xf32> to vector<128xf32>
    %159 = vector.shape_cast %158 : vector<128xf32> to vector<1x128xf32>
    %cst_62 = arith.constant 1.000000e-24 : f32
    %160 = vector.broadcast %cst_62 : f32 to vector<1x128xf32>
    %161 = arith.maximumf %159, %160 : vector<1x128xf32>
    %162 = math.rsqrt %161 : vector<1x128xf32>
    %163 = vector.broadcast %162 : vector<1x128xf32> to vector<8x128xf32>
    %164 = arith.mulf %154, %163 : vector<8x128xf32>
    %165 = arith.select %15, %164, %154 : vector<8x128xi1>, vector<8x128xf32>
    %c0_63 = arith.constant 0 : index
    %166 = arith.index_cast %120 : i32 to index
    %167 = vector.load %arg10[%c0_63, %166] : memref<8x512xf32, #tpu.memory_space<vmem>>, vector<8x128xf32>
    tpu.vector_store %arg10[%c0_63, %166], %165 {strides = array<i32>} : memref<8x512xf32, #tpu.memory_space<vmem>>, vector<8x128xf32>,
    %c3_i32_64 = arith.constant 3 : i32
    %c128_i32_65 = arith.constant 128 : i32
    %168 = arith.muli %c3_i32_64, %c128_i32_65 : i32
    %169 = tpu.assume_multiple %168, 128 : i32
    %c0_66 = arith.constant 0 : index
    %170 = arith.index_cast %169 : i32 to index
    %171 = vector.load %arg1[%c0_66, %170] : memref<32x512xbf16, #tpu.memory_space<vmem>>, vector<32x128xbf16>
    %cst_67 = arith.constant dense<0.000000e+00> : vector<32x128xf32>
    %172 = tpu.matmul %0, %171, %cst_67 {dimension_numbers = #tpu.dot_dimension_numbers<[1], [0], [0], [1], [0, 0, 1, 1], [], []>} : vector<32x32xbf16>, vector<32x128xbf16>, vector<32x128xf32> -> vector<32x128xf32>
    %173 = vector.broadcast %1 : vector<32x1xf32> to vector<32x128xf32>
    %174 = arith.addf %172, %173 : vector<32x128xf32>
    %cst_68 = arith.constant 0.000000e+00 : f32
    %175 = vector.broadcast %cst_68 : f32 to vector<32x128xf32>
    %176 = arith.maximumf %174, %175 : vector<32x128xf32>
    %177 = arith.truncf %176 : vector<32x128xf32> to vector<32x128xbf16>
    %cst_69 = arith.constant dense<0.000000e+00> : vector<32x128xf32>
    %178 = tpu.matmul %2, %177, %cst_69 {dimension_numbers = #tpu.dot_dimension_numbers<[1], [0], [0], [1], [0, 0, 1, 1], [], []>} : vector<32x32xbf16>, vector<32x128xbf16>, vector<32x128xf32> -> vector<32x128xf32>
    %179 = vector.broadcast %3 : vector<32x1xf32> to vector<32x128xf32>
    %180 = arith.addf %178, %179 : vector<32x128xf32>
    %cst_70 = arith.constant 0.000000e+00 : f32
    %181 = vector.broadcast %cst_70 : f32 to vector<32x128xf32>
    %182 = arith.maximumf %180, %181 : vector<32x128xf32>
    %183 = arith.truncf %182 : vector<32x128xf32> to vector<32x128xbf16>
    %cst_71 = arith.constant dense<0.000000e+00> : vector<96x128xf32>
    %184 = tpu.matmul %4, %183, %cst_71 {dimension_numbers = #tpu.dot_dimension_numbers<[1], [0], [0], [1], [0, 0, 1, 1], [], []>} : vector<96x32xbf16>, vector<32x128xbf16>, vector<96x128xf32> -> vector<96x128xf32>
    %185 = vector.broadcast %5 : vector<96x1xf32> to vector<96x128xf32>
    %186 = arith.addf %184, %185 : vector<96x128xf32>
    %cst_72 = arith.constant 0.000000e+00 : f32
    %187 = vector.broadcast %cst_72 : f32 to vector<96x128xf32>
    %188 = arith.maximumf %186, %187 : vector<96x128xf32>
    %189 = arith.truncf %188 : vector<96x128xf32> to vector<96x128xbf16>
    %cst_73 = arith.constant dense<0.000000e+00> : vector<8x128xf32>
    %190 = tpu.matmul %6, %189, %cst_73 {dimension_numbers = #tpu.dot_dimension_numbers<[1], [0], [0], [1], [0, 0, 1, 1], [], []>} : vector<8x96xbf16>, vector<96x128xbf16>, vector<8x128xf32> -> vector<8x128xf32>
    %191 = vector.broadcast %7 : vector<8x1xf32> to vector<8x128xf32>
    %192 = arith.addf %190, %191 : vector<8x128xf32>
    %cst_74 = arith.constant 5.000000e-01 : f32
    %193 = vector.broadcast %cst_74 : f32 to vector<8x128xf32>
    %194 = arith.mulf %193, %192 : vector<8x128xf32>
    %195 = arith.select %10, %194, %192 : vector<8x128xi1>, vector<8x128xf32>
    %196 = math.tanh %195 : vector<8x128xf32>
    %cst_75 = arith.constant 1.000000e+00 : f32
    %197 = vector.broadcast %cst_75 : f32 to vector<8x128xf32>
    %198 = arith.addf %196, %197 : vector<8x128xf32>
    %cst_76 = arith.constant 5.000000e-01 : f32
    %199 = vector.broadcast %cst_76 : f32 to vector<8x128xf32>
    %200 = arith.mulf %199, %198 : vector<8x128xf32>
    %201 = arith.select %15, %196, %192 : vector<8x128xi1>, vector<8x128xf32>
    %202 = arith.select %10, %200, %201 : vector<8x128xi1>, vector<8x128xf32>
    %203 = arith.addf %202, %20 : vector<8x128xf32>
    %cst_77 = arith.constant 0.000000e+00 : f32
    %204 = vector.broadcast %cst_77 : f32 to vector<8x128xf32>
    %205 = arith.select %15, %203, %204 : vector<8x128xi1>, vector<8x128xf32>
    %206 = arith.mulf %205, %205 : vector<8x128xf32>
    %cst_78 = arith.constant dense<0.000000e+00> : vector<128xf32>
    %207 = vector.multi_reduction <add>, %206, %cst_78 [0] : vector<8x128xf32> to vector<128xf32>
    %208 = vector.shape_cast %207 : vector<128xf32> to vector<1x128xf32>
    %cst_79 = arith.constant 1.000000e-24 : f32
    %209 = vector.broadcast %cst_79 : f32 to vector<1x128xf32>
    %210 = arith.maximumf %208, %209 : vector<1x128xf32>
    %211 = math.rsqrt %210 : vector<1x128xf32>
    %212 = vector.broadcast %211 : vector<1x128xf32> to vector<8x128xf32>
    %213 = arith.mulf %203, %212 : vector<8x128xf32>
    %214 = arith.select %15, %213, %203 : vector<8x128xi1>, vector<8x128xf32>
    %c0_80 = arith.constant 0 : index
    %215 = arith.index_cast %169 : i32 to index
    %216 = vector.load %arg10[%c0_80, %215] : memref<8x512xf32, #tpu.memory_space<vmem>>, vector<8x128xf32>
    tpu.vector_store %arg10[%c0_80, %215], %214 {strides = array<i32>} : memref<8x512xf32, #tpu.memory_space<vmem>>, vector<8x128xf32>,
    %c4_i32 = arith.constant 4 : i32
    return
  }
  func.func @transform_0(%arg0: i32) -> (i32, i32) {
    %c0_i32 = arith.constant 0 : i32
    %c0_i32_0 = arith.constant 0 : i32
    return %c0_i32, %arg0 : i32, i32
  }
  func.func @transform_1(%arg0: i32) -> (i32, i32) {
    %c0_i32 = arith.constant 0 : i32
    %c0_i32_0 = arith.constant 0 : i32
    %c0_i32_1 = arith.constant 0 : i32
    return %c0_i32, %c0_i32_0 : i32, i32
  }
  func.func @transform_2(%arg0: i32) -> (i32, i32) {
    %c0_i32 = arith.constant 0 : i32
    %c0_i32_0 = arith.constant 0 : i32
    %c0_i32_1 = arith.constant 0 : i32
    return %c0_i32, %c0_i32_0 : i32, i32
  }
  func.func @transform_3(%arg0: i32) -> (i32, i32) {
    %c0_i32 = arith.constant 0 : i32
    %c0_i32_0 = arith.constant 0 : i32
    %c0_i32_1 = arith.constant 0 : i32
    return %c0_i32, %c0_i32_0 : i32, i32
  }
  func.func @transform_4(%arg0: i32) -> (i32, i32) {
    %c0_i32 = arith.constant 0 : i32
    %c0_i32_0 = arith.constant 0 : i32
    %c0_i32_1 = arith.constant 0 : i32
    return %c0_i32, %c0_i32_0 : i32, i32
  }
  func.func @transform_5(%arg0: i32) -> (i32, i32) {
    %c0_i32 = arith.constant 0 : i32
    %c0_i32_0 = arith.constant 0 : i32
    %c0_i32_1 = arith.constant 0 : i32
    return %c0_i32, %c0_i32_0 : i32, i32
  }
  func.func @transform_6(%arg0: i32) -> (i32, i32) {
    %c0_i32 = arith.constant 0 : i32
    %c0_i32_0 = arith.constant 0 : i32
    %c0_i32_1 = arith.constant 0 : i32
    return %c0_i32, %c0_i32_0 : i32, i32
  }
  func.func @transform_7(%arg0: i32) -> (i32, i32) {
    %c0_i32 = arith.constant 0 : i32
    %c0_i32_0 = arith.constant 0 : i32
    %c0_i32_1 = arith.constant 0 : i32
    return %c0_i32, %c0_i32_0 : i32, i32
  }
  func.func @transform_8(%arg0: i32) -> (i32, i32) {
    %c0_i32 = arith.constant 0 : i32
    %c0_i32_0 = arith.constant 0 : i32
    %c0_i32_1 = arith.constant 0 : i32
    return %c0_i32, %c0_i32_0 : i32, i32
  }
  func.func @transform_9(%arg0: i32) -> (i32, i32) {
    %c0_i32 = arith.constant 0 : i32
    %c0_i32_0 = arith.constant 0 : i32
    return %c0_i32, %arg0 : i32, i32
  }
}

</mosaic_0001>

<bundles_post_ra>
// kernel: nsf_forward.1
= control target key start
LH: loop header
LB: loop body
LE: loop exit
PB: predicated region body
PF: predicated region fallthrough
CT: control target
= control target key end

     0   :  { %s1628_s30 = smov 0   ;;  %s1630_s10 = smov 0   ;;  %s2103_s0 = inlined_call_operand.vmem [shape: bf16[32,1024], index: 0, kind: input, shape index: {}]   ;;  %s2104_s1 = inlined_call_operand.vmem [shape: bf16[32,32], index: 1, kind: input, shape index: {}]   ;;  %s2105_s2 = inlined_call_operand.vmem [shape: f32[32,1], index: 2, kind: input, shape index: {}]   ;;  %s2106_s3 = inlined_call_operand.vmem [shape: bf16[32,32], index: 3, kind: input, shape index: {}]   ;;  %s2107_s4 = inlined_call_operand.vmem [shape: f32[32,1], index: 4, kind: input, shape index: {}]   ;;  %s2108_s5 = inlined_call_operand.vmem [shape: bf16[96,32], index: 5, kind: input, shape index: {}]   ;;  %s2109_s6 = inlined_call_operand.vmem [shape: f32[96,1], index: 6, kind: input, shape index: {}]   ;;  %s2110_s7 = inlined_call_operand.vmem [shape: bf16[8,96], index: 7, kind: input, shape index: {}]   ;;  %s2111_s8 = inlined_call_operand.vmem [shape: f32[8,1], index: 8, kind: input, shape index: {}]   ;;  %s2112_s9 = inlined_call_operand.vmem [shape: f32[8,1024], index: 9, kind: output, shape index: {}]  }
   0x1   :  { %s1632_s11 = smov 0  }
   0x2 LB: > { %s1342_s12 = sadd.s32 4294967295, %s1574_s11   ;;  %s1645_s13 = sadd.s32 1, %s1574_s11   ;;  %s1574_s11 = sphi %s1632_s11, %s2117_s11   ;;  %s1570_s10 = sphi %s1630_s10, %s2116_s10   ;;  %s1566_s30 = sphi %s1628_s30, %s2115_s30  }
   0x3   : > { %s23_s14 = ssub.s32 %s1574_s11, %s1645_s13  ;;  %s26_s15 = sadd.s32 1, %s1570_s10 }
   0x4   : > { %p24_p0 = scmp.eq.s32.totalorder %s23_s14, 0  ;;  %p33_p1 = scmp.ne.s32.totalorder %s1570_s10, %s1566_s30 }
   0x5   : > { %p34_p2 = scmp.eq.s32.totalorder %s1574_s11, 0  ;;  %p1345_p4 = scmp.ge.s32.totalorder %s1574_s11, 2 }
   0x6   : > { %s1654_s16 = scalar_select %p24_p0, %s1570_s10, %s26_s15  }
   0x7   : > { %p35_p3 = por %p34_p2, %p33_p1  ;;  %277 = sbr.rel (%p1345_p4) target bundleno = 24 (0x18), region = 48 }
   0xc   : > { %280 = sbr.rel (!%p35_p3) target bundleno = 24 (0x18), region = 52  ;;  %s282_s17 = sand.u32 (%p35_p3), 1, %s1570_s10  }
   0xd   : > { %s1486_s18 = sshll.u32 (%p35_p3), %s1574_s11, 4  ;;  %s1346_s19 = sshll.u32 (%p35_p3), %s282_s17, 6 }
   0xe   : > { %s287_s22 = scalar_lea.vmem (%p35_p3), %s2103_s0, %s1486_s18  ;;  %s284_s23 = scalar_lea.vmem (%p35_p3), [#allocation2], %s1346_s19 }
   0xf   : > { %v300_v0 = vld [vmem:[%s287_s22] sm:$0xff] (%p35_p3)  ;;  %v302_v1 = vld [vmem:[%s287_s22 + $0x8] sm:$0xff] (%p35_p3) }
  0x10   : > { %v304_v2 = vld [vmem:[%s287_s22 + $0x20] sm:$0xff] (%p35_p3)  ;;  %301 = vst [vmem:[%s284_s23] sm:$0xff] (%p35_p3), %v300_v0  ;;  %v306_v3 = vld [vmem:[%s287_s22 + $0x28] sm:$0xff] (%p35_p3) }
  0x11   : > { %303 = vst [vmem:[%s284_s23 + $0x8] sm:$0xff] %v302_v1  ;;  %v308_v4 = vld [vmem:[%s287_s22 + $0x40] sm:$0xff]  ;;  %v310_v5 = vld [vmem:[%s287_s22 + $0x48] sm:$0xff] }
  0x12   : > { %305 = vst [vmem:[%s284_s23 + $0x10] sm:$0xff] %v304_v2  ;;  %v312_v6 = vld [vmem:[%s287_s22 + $0x60] sm:$0xff]  ;;  %v314_v7 = vld [vmem:[%s287_s22 + $0x68] sm:$0xff] }
  0x13   : > { %307 = vst [vmem:[%s284_s23 + $0x18] sm:$0xff] %v306_v3 }
  0x14   : > { %309 = vst [vmem:[%s284_s23 + $0x20] sm:$0xff] %v308_v4 }
  0x15   : > { %311 = vst [vmem:[%s284_s23 + $0x28] sm:$0xff] %v310_v5 }
  0x16   : > { %313 = vst [vmem:[%s284_s23 + $0x30] sm:$0xff] %v312_v6 }
  0x17   : > { %315 = vst [vmem:[%s284_s23 + $0x38] sm:$0xff] %v314_v7 }
  0x18 PF: > { %p1349_p5 = scmp.ge.s32.totalorder %s1574_s11, 1  ;;  %p320_p6 = scmp.lt.s32.totalorder %s1574_s11, 3 }
  0x1a   : > { %p321_p7 = pnand %p1349_p5, %p320_p6 }
  0x1b   : > { %s327_s28 = sand.u32 (!%p321_p7), 1, %s1566_s30   ;;  %s1351_s30 = sshll.u32 (!%p321_p7), %s1342_s12, 2 }
  0x1c   : > { %324 = sbr.rel (%p321_p7) target bundleno = 1838 (0x72e), region = 75  ;;  %s1350_s29 = sshll.u32 (!%p321_p7), %s327_s28, 6 }
  0x1d   : > { %s1671_s14 = scalar_lea.vmem (!%p321_p7), [#allocation2], %s1350_s29  ;;  %p364_p8 = scmp.lt.s32.totalorder (!%p321_p7), %s1351_s30, 7 }
  0x21   : > { %v376_v8 = vld [vmem:[%s2105_s2 + $0x10] sm:$0xff]  ;;  %v374_v9 = vld [vmem:[%s2105_s2] sm:$0xff]  ;;  %v1576_v10 = vmov 0   ;;  %v377_v16 = vld [vmem:[%s2105_s2 + $0x18] sm:$0xff]  ;;  %vm466_vm0 = vcmask 261120   ;;  %vm729_vm1 = vcmask 785408  }
  0x22   : > { %1534 = vset.pattern.permute.xlu1 %v1576_v10  ;;  %1533 = vset.pattern.permute.xlu0 %v1576_v10  ;;  %v1367_v11 = vld [vmem:[%s1671_s14 + $0x20] sm:$0xf]  ;;  %v1498_v12 = vld [vmem:[%s1671_s14 + $0x2c] sm:$0xf0]  ;;  %v375_v17 = vld [vmem:[%s2105_s2 + $0x8] sm:$0xff]  ;;  %s2119_s30 = smov (!%p364_p8, %s1351_s30), 7 }
  0x23   : > { %436 = vperm.xlu0 %1533, %v376_v8   ;;  %426 = vperm.xlu1 %1534, %v374_v9   ;;  %v1368_v13 = vor.u32 %v1498_v12, %v1367_v11  ;;  %v1363_v14 = vld [vmem:[%s1671_s14] sm:$0xf]  ;;  %v1497_v15 = vld [vmem:[%s1671_s14 + $0xc] sm:$0xf0]  ;;  %v383_v21 = vld [vmem:[%s2107_s4 + $0x8] sm:$0xff]  ;;  %s1352_s11 = sshll.u32 %s2119_s30, 3 }
  0x24   : > { %1535 = vset.pattern.permute.xlu2 %v1576_v10  ;;  %v1364_v18 = vor.u32 %v1497_v15, %v1363_v14  ;;  %v1686_v19 = vld [vmem:[%s2104_s1] sm:$0xff]  ;;  %v409_v22 = vld [vmem:[%s2109_s6 + $0x58] sm:$0xff]  ;;  %v1705_v24 = vld [vmem:[%s2104_s1 + $0x8] sm:$0xff]  ;;  %s1961_s17 = scalar_lea.vmem %s2112_s9, %s1352_s11 }
  0x25   : > { %479 = vmatpush.bf16.msra.mxu0 %v1368_v13  ;;  %v382_v20 = vld [vmem:[%s2107_s4] sm:$0xff]  ;;  %v404_v25 = vld [vmem:[%s2109_s6 + $0x30] sm:$0xff]  ;;  %v405_v26 = vld [vmem:[%s2109_s6 + $0x38] sm:$0xff] }
  0x26   : > { %v406_v23 = vld [vmem:[%s2109_s6 + $0x40] sm:$0xff]  ;;  %v403_v27 = vld [vmem:[%s2109_s6 + $0x28] sm:$0xff]  ;;  %v400_v28 = vld [vmem:[%s2109_s6 + $0x10] sm:$0xff] }
  0x27   : > { %v398_v29 = vld [vmem:[%s2109_s6] sm:$0xff]  ;;  %v399_v30 = vld [vmem:[%s2109_s6 + $0x8] sm:$0xff]  ;;  %v1500_v48 = vld [vmem:[%s1671_s14 + $0x30] sm:$0xf0] }
  0x28   : > { %v1422_v47 = vld [vmem:[%s1671_s14 + $0x24] sm:$0xf]  ;;  %v1499_v53 = vld [vmem:[%s1671_s14 + $0x10] sm:$0xf0]  ;;  %v1751_v55 = vld [vmem:[%s2106_s3 + $0x8] sm:$0xff] }
  0x29   : > { %480 = vmatpush.bf16.msra.mxu0 %v1364_v18  ;;  %v1423_v50 = vor.u32 %v1500_v48, %v1422_v47  ;;  %v1418_v52 = vld [vmem:[%s1671_s14 + $0x4] sm:$0xf]  ;;  %v384_v57 = vld [vmem:[%s2107_s4 + $0x10] sm:$0xff]  ;;  %v385_v58 = vld [vmem:[%s2107_s4 + $0x18] sm:$0xff] }
  0x2a   : > { %v1746_v54 = vld [vmem:[%s2106_s3] sm:$0xff]  ;;  %v1419_v56 = vor.u32 %v1499_v53, %v1418_v52  ;;  %510 = vperm.xlu2 %1535, %v384_v57   ;;  %v408_v15 = vld [vmem:[%s2109_s6 + $0x50] sm:$0xff]  ;;  %v1792_v18 = vld [vmem:[%s2108_s5 + $0x8] sm:$0xff] }
  0x2b   : > { %441 = vperm.xlu0 %1533, %v377_v16   ;;  %431 = vperm.xlu1 %1534, %v375_v17   ;;  %v1782_v14 = vld [vmem:[%s2108_s5] sm:$0xff] }
  0x2c   : > { %1369 = vmatmul.msk.bf16.vlgmr.msra.gmra.mxu0 %vm466_vm0, %v1686_v19  ;;  %v411_v47 = vld [vmem:[%s2111_s8] sm:$0xff] }
  0x2d   : > { %v1837_v48 = vld [vmem:[%s2108_s5 + $0x20] sm:$0xff] }
  0x32   : > { %515 = vperm.xlu2 %1535, %v385_v58  }
  0x33   : > { %500 = vperm.xlu0 %1533, %v382_v20   ;;  %505 = vperm.xlu1 %1534, %v383_v21   ;;  %v407_v20 = vld [vmem:[%s2109_s6 + $0x48] sm:$0xff] }
  0x3a   : > { %611 = vperm.xlu2 %1535, %v408_v15  }
  0x3b   : > { %616 = vperm.xlu0 %1533, %v409_v22   ;;  %601 = vperm.xlu1 %1534, %v406_v23  }
  0x3c   : > { %1370 = vmatmul.msk.bf16.gmra.mxu0 %vm466_vm0, %v1705_v24 }
  0x42   : > { %606 = vperm.xlu2 %1535, %v407_v20  }
  0x43   : > { %591 = vperm.xlu0 %1533, %v404_v25   ;;  %596 = vperm.xlu1 %1534, %v405_v26  }
  0x4b   : > { %586 = vperm.xlu0 %1533, %v403_v27   ;;  %571 = vperm.xlu1 %1534, %v400_v28  }
  0x53   : > { %561 = vperm.xlu0 %1533, %v398_v29   ;;  %566 = vperm.xlu1 %1534, %v399_v30   ;;  %v402_v29 = vld [vmem:[%s2109_s6 + $0x20] sm:$0xff] }
  0x54   : > { %581 = vperm.xlu2 %1535, %v402_v29  }
  0x84   : > { %v1767_v59 = vpop.permute.xlu2 %510 }
  0x8c   : > { %v1770_v63 = vpop.permute.xlu2 %515 }
  0x95   : > { %v1727_v33 = vpop.permute.xlu0 %436  ;;  %v1729_v34 = vpop.permute.xlu1 %426 }
  0x9d   : > { %v1731_v36 = vpop.permute.xlu0 %441  ;;  %v1734_v38 = vpop.permute.xlu1 %431 }
  0xa5   : > { %v1772_v0 = vpop.permute.xlu1 %505  ;;  %v1776_v6 = vpop.permute.xlu0 %500 }
  0xa9   : > { %v482_v31 = vpop.f32.mrf.mxu0 }
  0xaa   : > { %v483_v42 = vadd.f32 %v482_v31, %v1729_v34 }
  0xac   : > { %v492_v49 = vmax.f32 %v483_v42, 0.0  ;;  %v1501_v42 = vld [vmem:[%s1671_s14 + $0x14] sm:$0xf0] }
  0xb1   : > { %v484_v32 = vpop.f32.mrf.mxu0 }
  0xb2   : > { %v485_v40 = vadd.f32 %v484_v32, %v1734_v38  ;;  %v1446_v32 = vld [vmem:[%s1671_s14 + $0x28] sm:$0xf] }
  0xb4   : > { %v493_v45 = vmax.f32 %v485_v40, 0.0 }
  0xb6   : > { %v496_v51 = vpack.c.bf16 %v493_v45, %v492_v49  ;;  %v401_v45 = vld [vmem:[%s2109_s6 + $0x18] sm:$0xff]  ;;  %v1846_v49 = vld [vmem:[%s2108_s5 + $0x28] sm:$0xff] }
  0xb7   : > { %576 = vperm.xlu2 %1535, %v401_v45  }
  0xb9   : > { %v487_v35 = vpop.f32.mrf.mxu0 }
  0xba   : > { %v488_v37 = vadd.f32 %v487_v35, %v1727_v33  ;;  %v1502_v35 = vld [vmem:[%s1671_s14 + $0x34] sm:$0xf0] }
  0xbc   : > { %v494_v43 = vmax.f32 %v488_v37, 0.0 }
  0xbf   : > { %726 = vperm.xlu2 %1535, %v411_v47  }
  0xc1   : > { %v489_v39 = vpop.f32.mrf.mxu0 }
  0xc2   : > { %v490_v41 = vadd.f32 %v489_v39, %v1731_v36  ;;  %v1447_v39 = vor.u32 %v1502_v35, %v1446_v32 }
  0xc4   : > { %v495_v44 = vmax.f32 %v490_v41, 0.0  ;;  %v1442_v41 = vld [vmem:[%s1671_s14 + $0x8] sm:$0xf] }
  0xc6   : > { %v497_v46 = vpack.c.bf16 %v495_v44, %v494_v43  ;;  %v1813_v43 = vld [vmem:[%s2108_s5 + $0x10] sm:$0xff]  ;;  %v1443_v44 = vor.u32 %v1501_v42, %v1442_v41 }
  0xc8   : > { %540 = vmatpush.bf16.msrb.mxu0 %v497_v46  ;;  %1505 = vmatpush.bf16.msra.mxu1 %v497_v46  ;;  %v1825_v46 = vld [vmem:[%s2108_s5 + $0x18] sm:$0xff] }
  0xcc   : > { %541 = vmatpush.bf16.msrb.mxu0 %v496_v51  ;;  %1506 = vmatpush.bf16.msra.mxu1 %v496_v51  ;;  %v1854_v51 = vpop.permute.xlu1 %601 }
  0xcf   : > { %1379 = vmatmul.msk.bf16.vlgmr.msrb.gmra.mxu0 %vm466_vm0, %v1746_v54  ;;  %1380 = vmatmul.msk.bf16.vlgmr.msra.gmra.mxu1 %vm466_vm0, %v1751_v55 }
  0xd0   : > { %799 = vmatpush.bf16.msra.mxu0 %v1423_v50  ;;  %v1852_v50 = vpop.permute.xlu0 %616 }
  0xd4   : > { %800 = vmatpush.bf16.msra.mxu0 %v1419_v56  ;;  %v1858_v53 = vpop.permute.xlu1 %596  ;;  %v1860_v56 = vpop.permute.xlu2 %611 }
  0xd8   : > { %v1856_v52 = vpop.permute.xlu0 %591 }
  0xdc   : > { %v1864_v58 = vpop.permute.xlu1 %571 }
  0xdf   : > { %1424 = vmatmul.msk.bf16.vlgmr.msra.gmra.mxu0 %vm466_vm0, %v1686_v19 }
  0xe0   : > { %v1862_v57 = vpop.permute.xlu0 %586 }
  0xef   : > { %1425 = vmatmul.msk.bf16.gmra.mxu0 %vm466_vm0, %v1705_v24 }
 0x14c   : > { %v543_v60 = vpop.f32.mrf.mxu0  ;;  %v548_v61 = vpop.f32.mrf.mxu1 }
 0x14d   : > { %v549_v62 = vadd.f32 %v548_v61, %v1767_v59  ;;  %v544_v7 = vadd.f32 %v543_v60, %v1776_v6  ;;  %v1866_v61 = vpop.permute.xlu2 %606 }
 0x14f   : > { %v555_v3 = vmax.f32 %v549_v62, 0.0  ;;  %v553_v11 = vmax.f32 %v544_v7, 0.0  ;;  %v1868_v62 = vpop.permute.xlu0 %561 }
 0x154   : > { %v545_v1 = vpop.f32.mrf.mxu0  ;;  %v550_v2 = vpop.f32.mrf.mxu1 }
 0x155   : > { %v546_v4 = vadd.f32 %v545_v1, %v1772_v0  ;;  %v551_v5 = vadd.f32 %v550_v2, %v1770_v63  ;;  %v1871_v2 = vpop.permute.xlu1 %566 }
 0x157   : > { %v556_v8 = vmax.f32 %v551_v5, 0.0  ;;  %v554_v9 = vmax.f32 %v546_v4, 0.0 }
 0x159   : > { %v558_v10 = vpack.c.bf16 %v556_v8, %v555_v3  ;;  %v557_v13 = vpack.c.bf16 %v554_v9, %v553_v11  ;;  %v1874_v8 = vpop.permute.xlu2 %581 }
 0x15b   : > { %673 = vmatpush.bf16.msra.mxu2 %v558_v10 }
 0x15c   : > { %v802_v12 = vpop.f32.mrf.mxu0 }
 0x15d   : > { %v803_v26 = vadd.f32 %v802_v12, %v1729_v34 }
 0x15f   : > { %674 = vmatpush.bf16.msra.mxu2 %v557_v13  ;;  %v812_v37 = vmax.f32 %v803_v26, 0.0 }
 0x161   : > { %v1876_v11 = vpop.permute.xlu2 %576 }
 0x162   : > { %1405 = vmatmul.msk.bf16.vlgmr.msra.gmra.mxu2 %vm466_vm0, %v1782_v14 }
 0x164   : > { %v804_v16 = vpop.f32.mrf.mxu0 }
 0x165   : > { %v805_v23 = vadd.f32 %v804_v16, %v1734_v38 }
 0x167   : > { %v813_v30 = vmax.f32 %v805_v23, 0.0 }
 0x169   : > { %v816_v40 = vpack.c.bf16 %v813_v30, %v812_v37 }
 0x16c   : > { %v807_v17 = vpop.f32.mrf.mxu0 }
 0x16d   : > { %v808_v21 = vadd.f32 %v807_v17, %v1727_v33 }
 0x16f   : > { %v814_v27 = vmax.f32 %v808_v21, 0.0 }
 0x172   : > { %1406 = vmatmul.msk.bf16.gmra.mxu2 %vm466_vm0, %v1792_v18 }
 0x174   : > { %v809_v22 = vpop.f32.mrf.mxu0 }
 0x175   : > { %v810_v25 = vadd.f32 %v809_v22, %v1731_v36 }
 0x177   : > { %v815_v28 = vmax.f32 %v810_v25, 0.0 }
 0x179   : > { %v817_v31 = vpack.c.bf16 %v815_v28, %v814_v27 }
 0x17b   : > { %824 = vmatpush.bf16.msrb.mxu1 %v817_v31 }
 0x17f   : > { %825 = vmatpush.bf16.msrb.mxu1 %v816_v40 }
 0x182   : > { %1407 = vmatmul.msk.bf16.gmra.mxu2 %vm466_vm0, %v1813_v43  ;;  %1426 = vmatmul.msk.bf16.vlgmr.msrb.gmra.mxu1 %vm466_vm0, %v1746_v54 }
 0x183   : > { %967 = vmatpush.bf16.msra.mxu1 %v1447_v39 }
 0x187   : > { %968 = vmatpush.bf16.msra.mxu1 %v1443_v44 }
 0x192   : > { %1408 = vmatmul.msk.bf16.gmra.mxu2 %vm466_vm0, %v1825_v46  ;;  %1427 = vmatmul.msk.bf16.gmra.mxu1 %vm466_vm0, %v1751_v55 }
 0x1a2   : > { %1409 = vmatmul.msk.bf16.gmra.mxu2 %vm466_vm0, %v1837_v48  ;;  %1448 = vmatmul.msk.bf16.vlgmr.msra.gmra.mxu1 %vm466_vm0, %v1686_v19 }
 0x1b2   : > { %1410 = vmatmul.msk.bf16.gmra.mxu2 %vm466_vm0, %v1846_v49  ;;  %1449 = vmatmul.msk.bf16.gmra.mxu1 %vm466_vm0, %v1705_v24 }
 0x1e5   : > { %v676_v60 = vpop.f32.mrf.mxu2 }
 0x1e6   : > { %v677_v1 = vadd.f32 %v676_v60, %v1868_v62 }
 0x1e8   : > { %v706_v5 = vmax.f32 %v677_v1, 0.0 }
 0x1ed   : > { %v678_v3 = vpop.f32.mrf.mxu2 }
 0x1ee   : > { %v679_v4 = vadd.f32 %v678_v3, %v1871_v2 }
 0x1f0   : > { %v707_v7 = vmax.f32 %v679_v4, 0.0 }
 0x1f2   : > { %v718_v9 = vpack.c.bf16 %v707_v7, %v706_v5 }
 0x1f5   : > { %v681_v10 = vpop.f32.mrf.mxu2 }
 0x1f6   : > { %v682_v12 = vadd.f32 %v681_v10, %v1864_v58 }
 0x1f8   : > { %v708_v17 = vmax.f32 %v682_v12, 0.0 }
 0x1fd   : > { %v683_v13 = vpop.f32.mrf.mxu2 }
 0x1fe   : > { %v684_v15 = vadd.f32 %v683_v13, %v1876_v11 }
 0x1ff   : > { %v827_v16 = vpop.f32.mrf.mxu1 }
 0x200   : > { %v709_v20 = vmax.f32 %v684_v15, 0.0  ;;  %v828_v32 = vadd.f32 %v827_v16, %v1776_v6 }
 0x202   : > { %v719_v21 = vpack.c.bf16 %v709_v20, %v708_v17  ;;  %v837_v42 = vmax.f32 %v828_v32, 0.0 }
 0x205   : > { %v686_v22 = vpop.f32.mrf.mxu2 }
 0x207   : > { %v829_v23 = vpop.f32.mrf.mxu1 }
 0x208   : > { %v830_v30 = vadd.f32 %v829_v23, %v1772_v0  ;;  %v687_v23 = vadd.f32 %v686_v22, %v1874_v8  ;;  %v1903_v22 = vld [vmem:[%s2110_s7] sm:$0xf] }
 0x20a   : > { %v838_v39 = vmax.f32 %v830_v30, 0.0 }
 0x20c   : > { %v841_v44 = vpack.c.bf16 %v838_v39, %v837_v42 }
 0x20d   : > { %v688_v25 = vpop.f32.mrf.mxu2 }
 0x20f   : > { %v832_v26 = vpop.f32.mrf.mxu1 }
 0x210   : > { %v833_v28 = vadd.f32 %v832_v26, %v1767_v59  ;;  %v689_v26 = vadd.f32 %v688_v25, %v1862_v57 }
 0x212   : > { %v839_v35 = vmax.f32 %v833_v28, 0.0  ;;  %v711_v32 = vmax.f32 %v689_v26, 0.0 }
 0x215   : > { %v691_v27 = vpop.f32.mrf.mxu2 }
 0x216   : > { %v692_v17 = vadd.f32 %v691_v27, %v1856_v52 }
 0x217   : > { %v834_v29 = vpop.f32.mrf.mxu1 }
 0x218   : > { %v835_v31 = vadd.f32 %v834_v29, %v1770_v63  ;;  %v712_v30 = vmax.f32 %v692_v17, 0.0 }
 0x21a   : > { %v840_v37 = vmax.f32 %v835_v31, 0.0  ;;  %v710_v31 = vmax.f32 %v687_v23, 0.0 }
 0x21c   : > { %v842_v40 = vpack.c.bf16 %v840_v37, %v839_v35  ;;  %v720_v37 = vpack.c.bf16 %v711_v32, %v710_v31  ;;  %v1577_v32 = vmov 0.0  }
 0x21d   : > { %v693_v41 = vpop.f32.mrf.mxu2 }
 0x21e   : > { %849 = vmatpush.bf16.msra.mxu3 %v842_v40  ;;  %v694_v13 = vadd.f32 %v693_v41, %v1858_v53 }
 0x220   : > { %v713_v28 = vmax.f32 %v694_v13, 0.0  ;;  %v1921_v13 = vpop.permute.xlu2 %726 }
 0x222   : > { %850 = vmatpush.bf16.msra.mxu3 %v841_v44  ;;  %v721_v35 = vpack.c.bf16 %v713_v28, %v712_v30 }
 0x225   : > { %v696_v45 = vpop.f32.mrf.mxu2  ;;  %1428 = vmatmul.msk.bf16.vlgmr.msra.gmra.mxu3 %vm466_vm0, %v1782_v14 }
 0x226   : > { %v697_v7 = vadd.f32 %v696_v45, %v1854_v51 }
 0x228   : > { %v714_v20 = vmax.f32 %v697_v7, 0.0 }
 0x22d   : > { %v698_v47 = vpop.f32.mrf.mxu2 }
 0x22e   : > { %v699_v4 = vadd.f32 %v698_v47, %v1866_v61 }
 0x230   : > { %v715_v15 = vmax.f32 %v699_v4, 0.0 }
 0x232   : > { %v722_v29 = vpack.c.bf16 %v715_v15, %v714_v20 }
 0x235   : > { %v701_v60 = vpop.f32.mrf.mxu2  ;;  %1429 = vmatmul.msk.bf16.gmra.mxu3 %vm466_vm0, %v1792_v18 }
 0x236   : > { %v702_v1 = vadd.f32 %v701_v60, %v1860_v56 }
 0x238   : > { %v716_v10 = vmax.f32 %v702_v1, 0.0 }
 0x23d   : > { %v703_v3 = vpop.f32.mrf.mxu2 }
 0x23e   : > { %v704_v5 = vadd.f32 %v703_v3, %v1852_v50 }
 0x240   : > { %v717_v12 = vmax.f32 %v704_v5, 0.0 }
 0x242   : > { %v723_v16 = vpack.c.bf16 %v717_v12, %v716_v10  ;;  %v412_v10 = vlaneseq }
 0x244   : > { %735 = vmatpush.bf16.msrb.mxu2 %v723_v16  ;;  %v1919_v12 = vshrl.u32 %v412_v10, 7 }
 0x245   : > { %1430 = vmatmul.msk.bf16.gmra.mxu3 %vm466_vm0, %v1813_v43 }
 0x246   : > { %vm414_vm2 = vcmp.lt.s32.totalorder %v1919_v12, 3  ;;  %vm415_vm3 = vcmp.ge.s32.totalorder %v1919_v12, 3  ;;  %vm416_vm4 = vcmp.lt.s32.totalorder %v1919_v12, 6  ;;  %vm418_vm5 = vcmp.eq.s32.totalorder %v1919_v12, 5 }
 0x247   : > { %vm1930_vm6 = vmand %vm415_vm3, %vm416_vm4 }
 0x248   : > { %736 = vmatpush.bf16.msrb.mxu2 %v722_v29 }
 0x24c   : > { %737 = vmatpush.bf16.msrb.mxu2 %v721_v35  ;;  %v1934_v35 = vsel %vm418_vm5, 1.0, %v1577_v32 }
 0x250   : > { %738 = vmatpush.bf16.msrb.mxu2 %v720_v37 }
 0x254   : > { %739 = vmatpush.bf16.msrb.mxu2 %v719_v21 }
 0x255   : > { %1431 = vmatmul.msk.bf16.gmra.mxu3 %vm466_vm0, %v1825_v46 }
 0x258   : > { %740 = vmatpush.bf16.msrb.mxu2 %v718_v9 }
 0x25b   : > { %1411 = vmatmul.msk.bf16.vlgmr.msrb.gmra.mxu2 %vm729_vm1, %v1903_v22 }
 0x265   : > { %1432 = vmatmul.msk.bf16.gmra.mxu3 %vm466_vm0, %v1837_v48 }
 0x275   : > { %1433 = vmatmul.msk.bf16.gmra.mxu3 %vm466_vm0, %v1846_v49 }
 0x2a8   : > { %v852_v21 = vpop.f32.mrf.mxu3 }
 0x2a9   : > { %v853_v25 = vadd.f32 %v852_v21, %v1868_v62 }
 0x2ab   : > { %v882_v39 = vmax.f32 %v853_v25, 0.0 }
 0x2b0   : > { %v854_v27 = vpop.f32.mrf.mxu3 }
 0x2b1   : > { %v855_v9 = vadd.f32 %v854_v27, %v1871_v2 }
 0x2b3   : > { %v883_v40 = vmax.f32 %v855_v9, 0.0 }
 0x2b5   : > { %v1913_v41 = vpack.c.bf16 %v883_v40, %v882_v39  ;;  %v970_v39 = vpop.f32.mrf.mxu1 }
 0x2b8   : > { %v857_v42 = vpop.f32.mrf.mxu3 }
 0x2b9   : > { %v858_v44 = vadd.f32 %v857_v42, %v1864_v58 }
 0x2bb   : > { %v884_v60 = vmax.f32 %v858_v44, 0.0 }
 0x2c0   : > { %v859_v45 = vpop.f32.mrf.mxu3 }
 0x2c1   : > { %v860_v47 = vadd.f32 %v859_v45, %v1876_v11 }
 0x2c3   : > { %v885_v1 = vmax.f32 %v860_v47, 0.0 }
 0x2c5   : > { %v1917_v3 = vpack.c.bf16 %v885_v1, %v884_v60  ;;  %v972_v1 = vpop.f32.mrf.mxu1 }
 0x2c8   : > { %v862_v4 = vpop.f32.mrf.mxu3 }
 0x2d0   : > { %v864_v5 = vpop.f32.mrf.mxu3 }
 0x2d8   : > { %v867_v7 = vpop.f32.mrf.mxu3 }
 0x2de   : > { %v742_v15 = vpop.f32.mrf.mxu2 }
 0x2df   : > { %v743_v16 = vadd.f32 %v742_v15, %v1921_v13 }
 0x2e0   : > { %v869_v17 = vpop.f32.mrf.mxu3 }
 0x2e1   : > { %v746_v20 = vmul.f32 0.5, %v743_v16 }
 0x2e3   : > { %v747_v23 = vsel %vm414_vm2, %v746_v20, %v743_v16 }
 0x2e4   : > { %1536 = vtanh.f32 %v747_v23 }
 0x2e6   : > { %v744_v26 = vpop.f32.mrf.mxu2 }
 0x2e8   : > { %v872_v28 = vpop.f32.mrf.mxu3 }
 0x2e9   : > { %v873_v32 = vadd.f32 %v872_v28, %v1854_v51 }
 0x2ea   : > { %v1537_v29 = vpop.eup %1536 }
 0x2eb   : > { %v749_v31 = vadd.f32 1.0, %v1537_v29  ;;  %v751_v21 = vsel %vm1930_vm6, %v1537_v29, %v743_v16 }
 0x2ed   : > { %v750_v37 = vmul.f32 0.5, %v749_v31 }
 0x2ef   : > { %v752_v25 = vsel %vm414_vm2, %v750_v37, %v751_v21 }
 0x2f0   : > { %v1941_v27 = vadd.f32 %v752_v25, %v1934_v35  ;;  %v874_v9 = vpop.f32.mrf.mxu3  ;;  %v975_v25 = vpop.f32.mrf.mxu1 }
 0x2f1   : > { %v875_v29 = vadd.f32 %v874_v9, %v1866_v61  ;;  %v865_v9 = vadd.f32 %v864_v5, %v1862_v57 }
 0x2f2   : > { %v754_v40 = vsel %vm1930_vm6, %v1941_v27, 0.0 }
 0x2f3   : > { %v755_v42 = vmul.f32 %v754_v40, %v754_v40  ;;  %v870_v40 = vadd.f32 %v869_v17, %v1858_v53 }
 0x2f5   : > { %v756_v44 = vrot.slane %v755_v42, 4 }
 0x2f7   : > { %v757_v45 = vadd.f32 %v756_v44, %v755_v42  ;;  %v891_v42 = vmax.f32 %v875_v29, 0.0 }
 0x2f8   : > { %v877_v47 = vpop.f32.mrf.mxu3 }
 0x2f9   : > { %v758_v60 = vrot.slane %v757_v45, 2  ;;  %v878_v20 = vadd.f32 %v877_v47, %v1860_v56  ;;  %v890_v47 = vmax.f32 %v873_v32, 0.0 }
 0x2fb   : > { %v759_v10 = vadd.f32 %v758_v60, %v757_v45  ;;  %v892_v37 = vmax.f32 %v878_v20, 0.0  ;;  %v868_v45 = vadd.f32 %v867_v7, %v1856_v52 }
 0x2fd   : > { %v760_v15 = vrot.slane %v759_v10, 1  ;;  %v888_v20 = vmax.f32 %v868_v45, 0.0  ;;  %v973_v45 = vadd.f32 %v972_v1, %v1734_v38 }
 0x2ff   : > { %v761_v16 = vadd.f32 %v760_v15, %v759_v10  ;;  %v889_v10 = vmax.f32 %v870_v40, 0.0  ;;  %v898_v15 = vpack.c.bf16 %v891_v42, %v890_v47 }
 0x300   : > { %v879_v23 = vpop.f32.mrf.mxu3 }
 0x301   : > { %v762_v26 = vmax.f32 %v761_v16, 1e-24  ;;  %v880_v31 = vadd.f32 %v879_v23, %v1852_v50  ;;  %v863_v16 = vadd.f32 %v862_v4, %v1874_v8  ;;  %v887_v23 = vmax.f32 %v865_v9, 0.0 }
 0x302   : > { %v897_v29 = vpack.c.bf16 %v889_v10, %v888_v20  ;;  %v976_v4 = vadd.f32 %v975_v25, %v1727_v33  ;;  %v971_v25 = vadd.f32 %v970_v39, %v1729_v34  ;;  %v981_v9 = vmax.f32 %v973_v45, 0.0 }
 0x303   : > { %1538 = vrsqrt.f32 %v762_v26  ;;  %v893_v21 = vmax.f32 %v880_v31, 0.0  ;;  %v977_v31 = vpop.f32.mrf.mxu1  ;;  %vm769_vm8 = vweird.f32 %v762_v26 }
 0x304   : > { %v978_v5 = vadd.f32 %v977_v31, %v1731_v36 }
 0x305   : > { %v899_v44 = vpack.c.bf16 %v893_v21, %v892_v37  ;;  %v886_v37 = vmax.f32 %v863_v16, 0.0  ;;  %v1504_v16 = vld [vmem:[%s1671_s14 + $0x38] sm:$0xf0] }
 0x306   : > { %v983_v47 = vmax.f32 %v978_v5, 0.0 }
 0x307   : > { %902 = vmatpush.bf16.msrb.mxu0 %v899_v44  ;;  %v896_v21 = vpack.c.bf16 %v887_v23, %v886_v37 }
 0x309   : > { %v1539_v60 = vpop.eup %1538 }
 0x30a   : > { %v764_v28 = vmul.f32 %v1539_v60, %v762_v26  ;;  %vm770_vm7 = vweird.f32 %v1539_v60 }
 0x30b   : > { %903 = vmatpush.bf16.msrb.mxu0 %v898_v15  ;;  %vm771_vm9 = vmor %vm769_vm8, %vm770_vm7  ;;  %v980_v15 = vmax.f32 %v971_v25, 0.0 }
 0x30c   : > { %v765_v17 = vmul.f32 %v1539_v60, %v764_v28  ;;  %v1470_v28 = vld [vmem:[%s1671_s14 + $0x2c] sm:$0xf] }
 0x30d   : > { %v984_v1 = vpack.c.bf16 %v981_v9, %v980_v15  ;;  %v1471_v20 = vor.u32 %v1504_v16, %v1470_v28 }
 0x30e   : > { %v766_v7 = vmul.f32 0.5, %v765_v17  ;;  %v1503_v17 = vld [vmem:[%s1671_s14 + $0x18] sm:$0xf0] }
 0x30f   : > { %904 = vmatpush.bf16.msrb.mxu0 %v897_v29 }
 0x310   : > { %v767_v32 = vsub.f32 1.5, %v766_v7 }
 0x312   : > { %v768_v40 = vmul.f32 %v1539_v60, %v767_v32 }
 0x313   : > { %905 = vmatpush.bf16.msrb.mxu0 %v896_v21 }
 0x314   : > { %v772_v42 = vsel %vm771_vm9, %v1539_v60, %v768_v40  ;;  %v982_v60 = vmax.f32 %v976_v4, 0.0 }
 0x315   : > { %v773_v44 = vmul.f32 %v772_v42, %v1941_v27 }
 0x316   : > { %v985_v10 = vpack.c.bf16 %v983_v47, %v982_v60 }
 0x317   : > { %v774_v26 = vsel %vm1930_vm6, %v773_v44, %v1941_v27  ;;  %906 = vmatpush.bf16.msrb.mxu0 %v1917_v3  ;;  %v1466_v27 = vld [vmem:[%s1671_s14 + $0xc] sm:$0xf] }
 0x318   : > { %775 = vst [vmem:[%s1961_s17] sm:$0xff] %v774_v26  ;;  %v1467_v3 = vor.u32 %v1503_v17, %v1466_v27 }
 0x31b   : > { %907 = vmatpush.bf16.msrb.mxu0 %v1913_v41 }
 0x31e   : > { %1434 = vmatmul.msk.bf16.vlgmr.msrb.gmra.mxu0 %vm729_vm1, %v1903_v22 }
 0x31f   : > { %992 = vmatpush.bf16.msra.mxu0 %v985_v10 }
 0x323   : > { %993 = vmatpush.bf16.msra.mxu0 %v984_v1 }
 0x327   : > { %1135 = vmatpush.bf16.msrb.mxu0 %v1471_v20 }
 0x32b   : > { %1136 = vmatpush.bf16.msrb.mxu0 %v1467_v3 }
 0x32e   : > { %1450 = vmatmul.msk.bf16.vlgmr.msra.gmra.mxu0 %vm466_vm0, %v1746_v54 }
 0x33e   : > { %1451 = vmatmul.msk.bf16.gmra.mxu0 %vm466_vm0, %v1751_v55 }
 0x34e   : > { %1472 = vmatmul.msk.bf16.vlgmr.msrb.gmra.mxu0 %vm466_vm0, %v1686_v19 }
 0x35e   : > { %1473 = vmatmul.msk.bf16.gmra.mxu0 %vm466_vm0, %v1705_v24 }
 0x39b   : > { %v909_v41 = vpop.f32.mrf.mxu0 }
 0x39c   : > { %v910_v39 = vadd.f32 %v909_v41, %v1921_v13 }
 0x39e   : > { %v913_v23 = vmul.f32 0.5, %v910_v39 }
 0x3a0   : > { %v914_v29 = vsel %vm414_vm2, %v913_v23, %v910_v39 }
 0x3a1   : > { %1540 = vtanh.f32 %v914_v29 }
 0x3a3   : > { %v911_v7 = vpop.f32.mrf.mxu0 }
 0x3a7   : > { %v1541_v31 = vpop.eup %1540 }
 0x3a8   : > { %v916_v37 = vadd.f32 1.0, %v1541_v31  ;;  %v918_v21 = vsel %vm1930_vm6, %v1541_v31, %v910_v39 }
 0x3aa   : > { %v917_v32 = vmul.f32 0.5, %v916_v37 }
 0x3ab   : > { %v995_v5 = vpop.f32.mrf.mxu0 }
 0x3ac   : > { %v919_v19 = vsel %vm414_vm2, %v917_v32, %v918_v21  ;;  %v996_v20 = vadd.f32 %v995_v5, %v1776_v6 }
 0x3ad   : > { %v920_v24 = vadd.f32 %v919_v19, %v1934_v35 }
 0x3ae   : > { %v1005_v7 = vmax.f32 %v996_v20, 0.0 }
 0x3af   : > { %v921_v40 = vsel %vm1930_vm6, %v920_v24, 0.0 }
 0x3b0   : > { %v922_v4 = vmul.f32 %v921_v40, %v921_v40 }
 0x3b2   : > { %v923_v42 = vrot.slane %v922_v4, 4 }
 0x3b3   : > { %v997_v44 = vpop.f32.mrf.mxu0 }
 0x3b4   : > { %v924_v45 = vadd.f32 %v923_v42, %v922_v4  ;;  %v998_v28 = vadd.f32 %v997_v44, %v1772_v0 }
 0x3b6   : > { %v925_v47 = vrot.slane %v924_v45, 2  ;;  %v1006_v39 = vmax.f32 %v998_v28, 0.0 }
 0x3b8   : > { %v926_v26 = vadd.f32 %v925_v47, %v924_v45  ;;  %v1009_v37 = vpack.c.bf16 %v1006_v39, %v1005_v7 }
 0x3ba   : > { %v927_v25 = vrot.slane %v926_v26, 1 }
 0x3bb   : > { %v1000_v60 = vpop.f32.mrf.mxu0 }
 0x3bc   : > { %v928_v9 = vadd.f32 %v927_v25, %v926_v26  ;;  %v1001_v15 = vadd.f32 %v1000_v60, %v1767_v59 }
 0x3be   : > { %v929_v10 = vmax.f32 %v928_v9, 1e-24  ;;  %v1007_v17 = vmax.f32 %v1001_v15, 0.0 }
 0x3c0   : > { %1542 = vrsqrt.f32 %v929_v10  ;;  %vm936_vm11 = vweird.f32 %v929_v10 }
 0x3c3   : > { %v1002_v1 = vpop.f32.mrf.mxu0 }
 0x3c4   : > { %v1003_v16 = vadd.f32 %v1002_v1, %v1770_v63 }
 0x3c6   : > { %v1543_v27 = vpop.eup %1542  ;;  %v1008_v3 = vmax.f32 %v1003_v16, 0.0 }
 0x3c7   : > { %v931_v41 = vmul.f32 %v1543_v27, %v929_v10  ;;  %vm937_vm10 = vweird.f32 %v1543_v27 }
 0x3c8   : > { %v1010_v23 = vpack.c.bf16 %v1008_v3, %v1007_v17  ;;  %vm938_vm12 = vmor %vm936_vm11, %vm937_vm10 }
 0x3c9   : > { %v932_v29 = vmul.f32 %v1543_v27, %v931_v41 }
 0x3ca   : > { %1017 = vmatpush.bf16.msrb.mxu1 %v1010_v23 }
 0x3cb   : > { %v933_v31 = vmul.f32 0.5, %v932_v29  ;;  %v1138_v39 = vpop.f32.mrf.mxu0 }
 0x3cd   : > { %v934_v32 = vsub.f32 1.5, %v933_v31 }
 0x3ce   : > { %1018 = vmatpush.bf16.msrb.mxu1 %v1009_v37 }
 0x3cf   : > { %v935_v21 = vmul.f32 %v1543_v27, %v934_v32 }
 0x3d1   : > { %v939_v19 = vsel %vm938_vm12, %v1543_v27, %v935_v21  ;;  %1452 = vmatmul.msk.bf16.vlgmr.msrb.gmra.mxu1 %vm466_vm0, %v1782_v14 }
 0x3d2   : > { %v940_v5 = vmul.f32 %v939_v19, %v920_v24 }
 0x3d3   : > { %v1140_v29 = vpop.f32.mrf.mxu0 }
 0x3d4   : > { %v941_v40 = vsel %vm1930_vm6, %v940_v5, %v920_v24 }
 0x3d5   : > { %1435 = vst [vmem:[%s1961_s17 + $0x8] sm:$0xff] %v941_v40 }
 0x3db   : > { %v1143_v40 = vpop.f32.mrf.mxu0 }
 0x3e1   : > { %1453 = vmatmul.msk.bf16.gmra.mxu1 %vm466_vm0, %v1792_v18 }
 0x3f1   : > { %1454 = vmatmul.msk.bf16.gmra.mxu1 %vm466_vm0, %v1813_v43 }
 0x401   : > { %1455 = vmatmul.msk.bf16.gmra.mxu1 %vm466_vm0, %v1825_v46 }
 0x411   : > { %1456 = vmatmul.msk.bf16.gmra.mxu1 %vm466_vm0, %v1837_v48 }
 0x421   : > { %1457 = vmatmul.msk.bf16.gmra.mxu1 %vm466_vm0, %v1846_v49 }
 0x44e   : > { %v1020_v4 = vpop.f32.mrf.mxu1 }
 0x44f   : > { %v1021_v42 = vadd.f32 %v1020_v4, %v1868_v62 }
 0x451   : > { %v1050_v45 = vmax.f32 %v1021_v42, 0.0 }
 0x456   : > { %v1022_v24 = vpop.f32.mrf.mxu1 }
 0x457   : > { %v1023_v44 = vadd.f32 %v1022_v24, %v1871_v2 }
 0x459   : > { %v1051_v47 = vmax.f32 %v1023_v44, 0.0 }
 0x45b   : > { %v1062_v26 = vpack.c.bf16 %v1051_v47, %v1050_v45 }
 0x45e   : > { %v1025_v25 = vpop.f32.mrf.mxu1 }
 0x45f   : > { %v1026_v60 = vadd.f32 %v1025_v25, %v1864_v58 }
 0x461   : > { %v1052_v15 = vmax.f32 %v1026_v60, 0.0 }
 0x466   : > { %v1027_v9 = vpop.f32.mrf.mxu1 }
 0x467   : > { %v1028_v10 = vadd.f32 %v1027_v9, %v1876_v11 }
 0x469   : > { %v1053_v1 = vmax.f32 %v1028_v10, 0.0 }
 0x46b   : > { %v1063_v28 = vpack.c.bf16 %v1053_v1, %v1052_v15 }
 0x46e   : > { %v1030_v16 = vpop.f32.mrf.mxu1 }
 0x46f   : > { %v1031_v9 = vadd.f32 %v1030_v16, %v1874_v8 }
 0x476   : > { %v1032_v27 = vpop.f32.mrf.mxu1 }
 0x477   : > { %v1033_v47 = vadd.f32 %v1032_v27, %v1862_v57 }
 0x479   : > { %v1055_v15 = vmax.f32 %v1033_v47, 0.0 }
 0x47e   : > { %v1035_v20 = vpop.f32.mrf.mxu1 }
 0x47f   : > { %v1036_v44 = vadd.f32 %v1035_v20, %v1856_v52  ;;  %v1144_v20 = vadd.f32 %v1143_v40, %v1727_v33 }
 0x481   : > { %v1056_v10 = vmax.f32 %v1036_v44, 0.0  ;;  %v1150_v16 = vmax.f32 %v1144_v20, 0.0 }
 0x486   : > { %v1037_v17 = vpop.f32.mrf.mxu1 }
 0x487   : > { %v1038_v4 = vadd.f32 %v1037_v17, %v1858_v53 }
 0x489   : > { %v1057_v25 = vmax.f32 %v1038_v4, 0.0 }
 0x48b   : > { %v1065_v1 = vpack.c.bf16 %v1057_v25, %v1056_v10 }
 0x48e   : > { %v1040_v3 = vpop.f32.mrf.mxu1 }
 0x48f   : > { %v1041_v21 = vadd.f32 %v1040_v3, %v1854_v51  ;;  %v1145_v3 = vpop.f32.mrf.mxu0 }
 0x491   : > { %v1058_v45 = vmax.f32 %v1041_v21, 0.0 }
 0x496   : > { %v1042_v41 = vpop.f32.mrf.mxu1 }
 0x497   : > { %v1043_v37 = vadd.f32 %v1042_v41, %v1866_v61  ;;  %v1054_v41 = vmax.f32 %v1031_v9, 0.0 }
 0x499   : > { %v1059_v42 = vmax.f32 %v1043_v37, 0.0  ;;  %v1064_v17 = vpack.c.bf16 %v1055_v15, %v1054_v41 }
 0x49b   : > { %v1066_v60 = vpack.c.bf16 %v1059_v42, %v1058_v45 }
 0x49e   : > { %v1045_v23 = vpop.f32.mrf.mxu1 }
 0x49f   : > { %v1046_v7 = vadd.f32 %v1045_v23, %v1860_v56  ;;  %v1146_v23 = vadd.f32 %v1145_v3, %v1731_v36 }
 0x4a1   : > { %v1060_v19 = vmax.f32 %v1046_v7, 0.0  ;;  %v1141_v7 = vadd.f32 %v1140_v29, %v1734_v38  ;;  %v1151_v27 = vmax.f32 %v1146_v23, 0.0 }
 0x4a3   : > { %v1149_v37 = vmax.f32 %v1141_v7, 0.0 }
 0x4a6   : > { %v1047_v31 = vpop.f32.mrf.mxu1 }
 0x4a7   : > { %v1048_v32 = vadd.f32 %v1047_v31, %v1852_v50  ;;  %v1139_v31 = vadd.f32 %v1138_v39, %v1729_v34 }
 0x4a9   : > { %v1061_v5 = vmax.f32 %v1048_v32, 0.0  ;;  %v1153_v32 = vpack.c.bf16 %v1151_v27, %v1150_v16  ;;  %v1148_v21 = vmax.f32 %v1139_v31, 0.0 }
 0x4ab   : > { %v1067_v24 = vpack.c.bf16 %v1061_v5, %v1060_v19  ;;  %v1152_v19 = vpack.c.bf16 %v1149_v37, %v1148_v21 }
 0x4ad   : > { %1070 = vmatpush.bf16.msra.mxu2 %v1067_v24 }
 0x4b1   : > { %1071 = vmatpush.bf16.msra.mxu2 %v1066_v60 }
 0x4b5   : > { %1072 = vmatpush.bf16.msra.mxu2 %v1065_v1 }
 0x4b9   : > { %1073 = vmatpush.bf16.msra.mxu2 %v1064_v17 }
 0x4bd   : > { %1074 = vmatpush.bf16.msra.mxu2 %v1063_v28 }
 0x4c1   : > { %1075 = vmatpush.bf16.msra.mxu2 %v1062_v26 }
 0x4c4   : > { %1458 = vmatmul.msk.bf16.vlgmr.msra.gmra.mxu2 %vm729_vm1, %v1903_v22 }
 0x4c5   : > { %1160 = vmatpush.bf16.msrb.mxu2 %v1153_v32 }
 0x4c9   : > { %1161 = vmatpush.bf16.msrb.mxu2 %v1152_v19 }
 0x4d4   : > { %1474 = vmatmul.msk.bf16.vlgmr.msrb.gmra.mxu2 %vm466_vm0, %v1746_v54 }
 0x4e4   : > { %1475 = vmatmul.msk.bf16.gmra.mxu2 %vm466_vm0, %v1751_v55 }
 0x547   : > { %v1077_v33 = vpop.f32.mrf.mxu2 }
 0x548   : > { %v1078_v34 = vadd.f32 %v1077_v33, %v1921_v13 }
 0x54a   : > { %v1081_v36 = vmul.f32 0.5, %v1078_v34 }
 0x54c   : > { %v1082_v38 = vsel %vm414_vm2, %v1081_v36, %v1078_v34 }
 0x54d   : > { %1544 = vtanh.f32 %v1082_v38 }
 0x54f   : > { %v1079_v26 = vpop.f32.mrf.mxu2 }
 0x553   : > { %v1545_v28 = vpop.eup %1544 }
 0x554   : > { %v1084_v39 = vadd.f32 1.0, %v1545_v28  ;;  %v1086_v5 = vsel %vm1930_vm6, %v1545_v28, %v1078_v34 }
 0x556   : > { %v1085_v29 = vmul.f32 0.5, %v1084_v39 }
 0x557   : > { %v1163_v40 = vpop.f32.mrf.mxu2 }
 0x558   : > { %v1087_v54 = vsel %vm414_vm2, %v1085_v29, %v1086_v5  ;;  %v1164_v20 = vadd.f32 %v1163_v40, %v1776_v6 }
 0x559   : > { %v1088_v55 = vadd.f32 %v1087_v54, %v1934_v35 }
 0x55a   : > { %v1173_v21 = vmax.f32 %v1164_v20, 0.0 }
 0x55b   : > { %v1089_v4 = vsel %vm1930_vm6, %v1088_v55, 0.0 }
 0x55c   : > { %v1090_v42 = vmul.f32 %v1089_v4, %v1089_v4 }
 0x55e   : > { %v1091_v24 = vrot.slane %v1090_v42, 4 }
 0x55f   : > { %v1165_v44 = vpop.f32.mrf.mxu2 }
 0x560   : > { %v1092_v45 = vadd.f32 %v1091_v24, %v1090_v42  ;;  %v1166_v41 = vadd.f32 %v1165_v44, %v1772_v0 }
 0x562   : > { %v1093_v47 = vrot.slane %v1092_v45, 2  ;;  %v1174_v16 = vmax.f32 %v1166_v41, 0.0 }
 0x564   : > { %v1094_v25 = vadd.f32 %v1093_v47, %v1092_v45  ;;  %v1177_v33 = vpack.c.bf16 %v1174_v16, %v1173_v21 }
 0x566   : > { %v1095_v60 = vrot.slane %v1094_v25, 1 }
 0x567   : > { %v1168_v9 = vpop.f32.mrf.mxu2 }
 0x568   : > { %v1096_v10 = vadd.f32 %v1095_v60, %v1094_v25  ;;  %v1169_v1 = vadd.f32 %v1168_v9, %v1767_v59 }
 0x56a   : > { %v1097_v15 = vmax.f32 %v1096_v10, 1e-24  ;;  %v1175_v7 = vmax.f32 %v1169_v1, 0.0 }
 0x56c   : > { %1546 = vrsqrt.f32 %v1097_v15  ;;  %vm1104_vm14 = vweird.f32 %v1097_v15 }
 0x56f   : > { %v1170_v3 = vpop.f32.mrf.mxu2 }
 0x570   : > { %v1171_v17 = vadd.f32 %v1170_v3, %v1770_v63 }
 0x572   : > { %v1547_v23 = vpop.eup %1546  ;;  %v1176_v27 = vmax.f32 %v1171_v17, 0.0 }
 0x573   : > { %v1099_v31 = vmul.f32 %v1547_v23, %v1097_v15  ;;  %vm1105_vm13 = vweird.f32 %v1547_v23 }
 0x574   : > { %v1178_v37 = vpack.c.bf16 %v1176_v27, %v1175_v7  ;;  %vm1106_vm15 = vmor %vm1104_vm14, %vm1105_vm13 }
 0x575   : > { %v1100_v32 = vmul.f32 %v1547_v23, %v1099_v31 }
 0x576   : > { %1185 = vmatpush.bf16.msrb.mxu3 %v1178_v37 }
 0x577   : > { %v1101_v19 = vmul.f32 0.5, %v1100_v32 }
 0x579   : > { %v1102_v59 = vsub.f32 1.5, %v1101_v19 }
 0x57a   : > { %1186 = vmatpush.bf16.msrb.mxu3 %v1177_v33 }
 0x57b   : > { %v1103_v0 = vmul.f32 %v1547_v23, %v1102_v59 }
 0x57d   : > { %v1107_v63 = vsel %vm1106_vm15, %v1547_v23, %v1103_v0  ;;  %1476 = vmatmul.msk.bf16.vlgmr.msrb.gmra.mxu3 %vm466_vm0, %v1782_v14 }
 0x57e   : > { %v1108_v6 = vmul.f32 %v1107_v63, %v1088_v55 }
 0x580   : > { %v1109_v34 = vsel %vm1930_vm6, %v1108_v6, %v1088_v55 }
 0x581   : > { %1459 = vst [vmem:[%s1961_s17 + $0x10] sm:$0xff] %v1109_v34 }
 0x58d   : > { %1477 = vmatmul.msk.bf16.gmra.mxu3 %vm466_vm0, %v1792_v18 }
 0x59d   : > { %1478 = vmatmul.msk.bf16.gmra.mxu3 %vm466_vm0, %v1813_v43 }
 0x5ad   : > { %1479 = vmatmul.msk.bf16.gmra.mxu3 %vm466_vm0, %v1825_v46 }
 0x5bd   : > { %1480 = vmatmul.msk.bf16.gmra.mxu3 %vm466_vm0, %v1837_v48 }
 0x5cd   : > { %1481 = vmatmul.msk.bf16.gmra.mxu3 %vm466_vm0, %v1846_v49 }
 0x600   : > { %v1188_v14 = vpop.f32.mrf.mxu3 }
 0x601   : > { %v1189_v36 = vadd.f32 %v1188_v14, %v1868_v62 }
 0x603   : > { %v1218_v28 = vmax.f32 %v1189_v36, 0.0 }
 0x608   : > { %v1190_v38 = vpop.f32.mrf.mxu3 }
 0x609   : > { %v1191_v26 = vadd.f32 %v1190_v38, %v1871_v2 }
 0x60b   : > { %v1219_v18 = vmax.f32 %v1191_v26, 0.0 }
 0x60d   : > { %v1230_v39 = vpack.c.bf16 %v1219_v18, %v1218_v28 }
 0x610   : > { %v1193_v29 = vpop.f32.mrf.mxu3 }
 0x611   : > { %v1194_v43 = vadd.f32 %v1193_v29, %v1864_v58 }
 0x613   : > { %v1220_v40 = vmax.f32 %v1194_v43, 0.0 }
 0x618   : > { %v1195_v5 = vpop.f32.mrf.mxu3 }
 0x619   : > { %v1196_v46 = vadd.f32 %v1195_v5, %v1876_v11 }
 0x61b   : > { %v1221_v48 = vmax.f32 %v1196_v46, 0.0 }
 0x61d   : > { %v1231_v54 = vpack.c.bf16 %v1221_v48, %v1220_v40 }
 0x620   : > { %v1198_v55 = vpop.f32.mrf.mxu3 }
 0x628   : > { %v1200_v49 = vpop.f32.mrf.mxu3 }
 0x629   : > { %v1201_v41 = vadd.f32 %v1200_v49, %v1862_v57 }
 0x630   : > { %v1203_v4 = vpop.f32.mrf.mxu3 }
 0x631   : > { %v1204_v1 = vadd.f32 %v1203_v4, %v1856_v52 }
 0x633   : > { %v1224_v23 = vmax.f32 %v1204_v1, 0.0 }
 0x638   : > { %v1205_v42 = vpop.f32.mrf.mxu3 }
 0x639   : > { %v1206_v9 = vadd.f32 %v1205_v42, %v1858_v53 }
 0x640   : > { %v1208_v62 = vpop.f32.mrf.mxu3 }
 0x641   : > { %v1209_v25 = vadd.f32 %v1208_v62, %v1854_v51 }
 0x643   : > { %v1226_v3 = vmax.f32 %v1209_v25, 0.0 }
 0x648   : > { %v1210_v24 = vpop.f32.mrf.mxu3 }
 0x649   : > { %v1211_v47 = vadd.f32 %v1210_v24, %v1866_v61  ;;  %v1199_v61 = vadd.f32 %v1198_v55, %v1874_v8 }
 0x64b   : > { %v1227_v10 = vmax.f32 %v1211_v47, 0.0  ;;  %v1222_v20 = vmax.f32 %v1199_v61, 0.0 }
 0x64d   : > { %v1234_v17 = vpack.c.bf16 %v1227_v10, %v1226_v3 }
 0x650   : > { %v1213_v44 = vpop.f32.mrf.mxu3 }
 0x651   : > { %v1214_v2 = vadd.f32 %v1213_v44, %v1860_v56  ;;  %v1225_v56 = vmax.f32 %v1206_v9, 0.0 }
 0x653   : > { %v1228_v11 = vmax.f32 %v1214_v2, 0.0  ;;  %v1233_v51 = vpack.c.bf16 %v1225_v56, %v1224_v23 }
 0x658   : > { %v1215_v45 = vpop.f32.mrf.mxu3 }
 0x659   : > { %v1216_v58 = vadd.f32 %v1215_v45, %v1852_v50  ;;  %v1223_v50 = vmax.f32 %v1201_v41, 0.0 }
 0x65b   : > { %v1229_v60 = vmax.f32 %v1216_v58, 0.0  ;;  %v1232_v7 = vpack.c.bf16 %v1223_v50, %v1222_v20 }
 0x65d   : > { %v1235_v15 = vpack.c.bf16 %v1229_v60, %v1228_v11 }
 0x65f   : > { %1238 = vmatpush.bf16.msra.mxu0 %v1235_v15 }
 0x663   : > { %1239 = vmatpush.bf16.msra.mxu0 %v1234_v17 }
 0x667   : > { %1240 = vmatpush.bf16.msra.mxu0 %v1233_v51 }
 0x66b   : > { %1241 = vmatpush.bf16.msra.mxu0 %v1232_v7 }
 0x66f   : > { %1242 = vmatpush.bf16.msra.mxu0 %v1231_v54 }
 0x673   : > { %1243 = vmatpush.bf16.msra.mxu0 %v1230_v39 }
 0x676   : > { %1482 = vmatmul.msk.bf16.vlgmr.msra.gmra.mxu0 %vm729_vm1, %v1903_v22 }
 0x6f3   : > { %v1245_v52 = vpop.f32.mrf.mxu0 }
 0x6f4   : > { %v1246_v53 = vadd.f32 %v1245_v52, %v1921_v13 }
 0x6f6   : > { %v1249_v57 = vmul.f32 0.5, %v1246_v53 }
 0x6f8   : > { %v1250_v8 = vsel %vm414_vm2, %v1249_v57, %v1246_v53 }
 0x6f9   : > { %1548 = vtanh.f32 %v1250_v8 }
 0x6fb   : > { %v1247_v27 = vpop.f32.mrf.mxu0 }
 0x6ff   : > { %v1549_v31 = vpop.eup %1548 }
 0x700   : > { %v1252_v16 = vadd.f32 1.0, %v1549_v31  ;;  %v1254_v32 = vsel %vm1930_vm6, %v1549_v31, %v1246_v53 }
 0x702   : > { %v1253_v37 = vmul.f32 0.5, %v1252_v16 }
 0x704   : > { %v1255_v21 = vsel %vm414_vm2, %v1253_v37, %v1254_v32 }
 0x705   : > { %v1256_v22 = vadd.f32 %v1255_v21, %v1934_v35 }
 0x707   : > { %v1257_v13 = vsel %vm1930_vm6, %v1256_v22, 0.0 }
 0x708   : > { %v1258_v19 = vmul.f32 %v1257_v13, %v1257_v13 }
 0x70a   : > { %v1259_v33 = vrot.slane %v1258_v19, 4 }
 0x70c   : > { %v1260_v59 = vadd.f32 %v1259_v33, %v1258_v19 }
 0x70e   : > { %v1261_v0 = vrot.slane %v1260_v59, 2 }
 0x710   : > { %v1262_v63 = vadd.f32 %v1261_v0, %v1260_v59 }
 0x712   : > { %v1263_v6 = vrot.slane %v1262_v63, 1 }
 0x714   : > { %v1264_v34 = vadd.f32 %v1263_v6, %v1262_v63 }
 0x716   : > { %v1265_v14 = vmax.f32 %v1264_v34, 1e-24 }
 0x718   : > { %1550 = vrsqrt.f32 %v1265_v14  ;;  %vm1272_vm1 = vweird.f32 %v1265_v14 }
 0x71e   : > { %v1551_v36 = vpop.eup %1550 }
 0x71f   : > { %v1267_v38 = vmul.f32 %v1551_v36, %v1265_v14  ;;  %vm1273_vm0 = vweird.f32 %v1551_v36 }
 0x720   : > { %vm1274_vm2 = vmor %vm1272_vm1, %vm1273_vm0 }
 0x721   : > { %v1268_v26 = vmul.f32 %v1551_v36, %v1267_v38 }
 0x723   : > { %v1269_v12 = vmul.f32 0.5, %v1268_v26 }
 0x725   : > { %v1270_v28 = vsub.f32 1.5, %v1269_v12 }
 0x727   : > { %v1271_v35 = vmul.f32 %v1551_v36, %v1270_v28 }
 0x729   : > { %v1275_v18 = vsel %vm1274_vm2, %v1551_v36, %v1271_v35 }
 0x72a   : > { %v1276_v39 = vmul.f32 %v1275_v18, %v1256_v22 }
 0x72c   : > { %v1277_v29 = vsel %vm1930_vm6, %v1276_v39, %v1256_v22 }
 0x72d   : > { %1483 = vst [vmem:[%s1961_s17 + $0x18] sm:$0xff] %v1277_v29 }
 0x72e PF: > { %p16_p9 = scmp.ge.s32.totalorder %s1645_s13, 4   ;;  %s2115_s30 = smov %s1570_s10 }
 0x72f   : > { %s2116_s10 = smov %s1654_s16  ;;  %s2117_s11 = smov %s1645_s13 }
 0x730   :  { %18 = sbr.rel (!%p16_p9) target bundleno = 2 (0x2), region = 120 }

</bundles_post_ra>
